<compile_context>
chip_gen: v7x
topology: tpu7x:2x2x1
jax: 0.10.0
libtpu: 0.0.40
codegen_flags: <defaults>
</compile_context>

<pallas_src>
import functools

import jax
import jax.numpy as jnp
from jax import lax
from jax.experimental import pallas as pl
from jax.experimental.pallas import tpu as pltpu


VMEM = pl.BlockSpec(memory_space=pltpu.MemorySpace.VMEM)
SMEM = pl.BlockSpec(memory_space=pltpu.MemorySpace.SMEM)

K_FRIENDS = 10          # self.k in the PyTorch module
LSTM_BATCH_BLOCK = 256  # batch is embarrassingly parallel; multiple of 8


@functools.lru_cache(maxsize=1)
def _item_linear_config():
    """(tile_rows, vmem_limit_bytes) for the item-wide linear, per TPU generation."""
    tile_rows, vmem_limit = 4096, 48 * 1024 * 1024          # v7x-safe (64 MiB VMEM)
    try:
        info = pltpu.get_tpu_info()
        cap = getattr(info, "vmem_capacity_bytes", 0) or 0
        if cap >= 100 * 1024 * 1024:                        # v5e / v6e: 128 MiB VMEM
            tile_rows, vmem_limit = 8192, 96 * 1024 * 1024
    except Exception:                                       # pragma: no cover
        pass
    return tile_rows, vmem_limit


# ----------------------------- Pallas kernels ------------------------------ #

def _item_linear_kernel(x_ref, w_ref, cb_ref, ju_ref, jv_ref):
    # x: (tr, D) bf16, w: (D, 2D) bf16, cb: (tr, 2D) f32 (class one-hot + bias
    # pre-folded). f32 accumulation, bf16 writeback split into the two heads.
    D = ju_ref.shape[1]
    y = jnp.dot(x_ref[...], w_ref[...], preferred_element_type=jnp.float32)
    y = y + cb_ref[...]
    ju_ref[...] = y[:, :D].astype(ju_ref.dtype)
    jv_ref[...] = y[:, D:].astype(jv_ref.dtype)


def fused_item_linear(item_emb_bf16, w_bf16, class_bias):
    """l1 + l3 over the whole item table: item_emb @ [l1_w.T | l3_w.T] + class_bias."""
    R, D = item_emb_bf16.shape
    N2 = class_bias.shape[1]                    # 2 * D
    tile_rows, vmem_limit = _item_linear_config()
    tile_r = R if R <= tile_rows else tile_rows
    grid = (pl.cdiv(R, tile_r),)
    ju, jv = pl.pallas_call(
        _item_linear_kernel,
        out_shape=(jax.ShapeDtypeStruct((R, D), jnp.bfloat16),
                   jax.ShapeDtypeStruct((R, D), jnp.bfloat16)),
        grid=grid,
        in_specs=[pl.BlockSpec((tile_r, D), lambda i: (i, 0)),
                  pl.BlockSpec((D, N2), lambda i: (0, 0)),
                  pl.BlockSpec((tile_r, N2), lambda i: (i, 0))],
        out_specs=(pl.BlockSpec((tile_r, D), lambda i: (i, 0)),
                   pl.BlockSpec((tile_r, D), lambda i: (i, 0))),
        compiler_params=pltpu.CompilerParams(
            dimension_semantics=("parallel",),
            vmem_limit_bytes=vmem_limit),
    )(item_emb_bf16, w_bf16, class_bias)
    return ju, jv


def _lstm_kernel(mask_ref, x_ref, wih_ref, whh_ref, b_ref, hu_ref):
    # x: (L, Bb, D) bf16 time-major; mask: (Bb, 1) int32 = u_items_mask - 1.
    # Emits only h[mask-1] per row (no full (L,B,D) writeback, no scratch).
    L, Bb, D = x_ref.shape
    last_t = mask_ref[...]
    bias = b_ref[...]                           # (1, 4D) f32
    wih = wih_ref[...]                          # (D, 4D) bf16
    whh = whh_ref[...]                          # (D, 4D) bf16

    def step(t, carry):
        h, c, hsel = carry                      # h, c, hsel: (Bb, D) f32
        gates = (jnp.dot(x_ref[t], wih, preferred_element_type=jnp.float32)
                 + jnp.dot(h.astype(jnp.bfloat16), whh,
                           preferred_element_type=jnp.float32)
                 + bias)                        # (Bb, 4D) f32
        sg = jax.nn.sigmoid(gates)
        tg = jnp.tanh(gates)
        i_g = sg[:, 0:D]
        f_g = sg[:, D:2 * D]
        g_g = tg[:, 2 * D:3 * D]
        o_g = sg[:, 3 * D:4 * D]
        c_new = f_g * c + i_g * g_g
        h_new = o_g * jnp.tanh(c_new)
        hsel = jnp.where(last_t == t, h_new, hsel)
        return (h_new, c_new, hsel)

    zeros = jnp.zeros((Bb, D), jnp.float32)
    _, _, hu = lax.fori_loop(0, L, step, (zeros, zeros, zeros),
                             unroll=min(L, 8))
    hu_ref[...] = hu


def pallas_lstm(x_tbd, last_t, wih_t, whh_t, b):
    """Single-layer LSTM, PyTorch gate order (i, f, g, o); returns h[mask-1] only."""
    L, B, D = x_tbd.shape
    bb = B if B <= LSTM_BATCH_BLOCK else LSTM_BATCH_BLOCK
    grid = (pl.cdiv(B, bb),)
    return pl.pallas_call(
        _lstm_kernel,
        out_shape=jax.ShapeDtypeStruct((B, D), jnp.float32),
        grid=grid,
        in_specs=[pl.BlockSpec((bb, 1), lambda i: (i, 0)),
                  pl.BlockSpec((L, bb, D), lambda i: (0, i, 0)),
                  pl.BlockSpec((D, 4 * D), lambda i: (0, 0)),
                  pl.BlockSpec((D, 4 * D), lambda i: (0, 0)),
                  pl.BlockSpec((1, 4 * D), lambda i: (0, 0))],
        out_specs=pl.BlockSpec((bb, D), lambda i: (i, 0)),
        compiler_params=pltpu.CompilerParams(
            dimension_semantics=("parallel",)),
    )(last_t, x_tbd, wih_t, whh_t, b)


def _epilogue_kernel(lam_ref, hu_ref, su_ref, i_ref, yi_ref,
                     w2_ref, b2_ref, w5_ref, b5_ref, o_ref):
    # Fused l2 + l5 + S1..S4 + sigmoid.
    D = hu_ref.shape[1]
    hu, su, it, yi = hu_ref[...], su_ref[...], i_ref[...], yi_ref[...]

    def mlp(a, w_ref, b_ref):
        # == concat([a, it, a*it], 1) @ W + b, without a lane concat.
        return (jnp.dot(a, w_ref[0:D, :], preferred_element_type=jnp.float32)
                + jnp.dot(it, w_ref[D:2 * D, :], preferred_element_type=jnp.float32)
                + jnp.dot(a * it, w_ref[2 * D:3 * D, :],
                          preferred_element_type=jnp.float32)
                + b_ref[...])

    hui = mlp(hu, w2_ref, b2_ref)
    sui = mlp(su, w5_ref, b5_ref)
    s1 = jnp.sum(hu * yi, axis=1, keepdims=True)
    s2 = jnp.sum(hui * yi, axis=1, keepdims=True)
    s3 = jnp.sum(su * yi, axis=1, keepdims=True)
    s4 = jnp.sum(sui * yi, axis=1, keepdims=True)
    z = lam_ref[0] * s1 + lam_ref[1] * s2 + lam_ref[2] * s3 + lam_ref[3] * s4
    o_ref[...] = jax.nn.sigmoid(z)


def pallas_epilogue(lambdas, hu, su, i_emb, yi, w2_t, b2, w5_t, b5):
    B = hu.shape[0]
    out = pl.pallas_call(
        _epilogue_kernel,
        out_shape=jax.ShapeDtypeStruct((B, 1), jnp.float32),
        in_specs=[SMEM] + [VMEM] * 8,
        out_specs=VMEM,
    )(lambdas, hu, su, i_emb, yi, w2_t, b2, w5_t, b5)
    return out[:, 0]


# ------------------------------ FuseRec model ------------------------------ #

def init_params(key, n_users, n_items, D, i_class_num):
    """Torch-layout parameters (same init scheme as the nn.Module)."""
    ks = jax.random.split(key, 12)

    def xavier(k, shape):
        bound = (6.0 / (shape[0] + shape[1])) ** 0.5
        return jax.random.uniform(k, shape, jnp.float32, -bound, bound)

    def lin(k, out_f, in_f):
        bound = 1.0 / (in_f ** 0.5)
        kw, kb = jax.random.split(k)
        return (jax.random.uniform(kw, (out_f, in_f), jnp.float32, -bound, bound),
                jax.random.uniform(kb, (out_f,), jnp.float32, -bound, bound))

    l1_w, l1_b = lin(ks[2], D, D + i_class_num)
    l2_w, l2_b = lin(ks[3], D, 3 * D)
    l3_w, l3_b = lin(ks[4], D, D + i_class_num)
    l4_w, l4_b = lin(ks[5], 1, 2 * D)
    l5_w, l5_b = lin(ks[6], D, 3 * D)
    l6_w, l6_b = lin(ks[7], 1, 2 * D)

    lb = 1.0 / (D ** 0.5)
    return dict(
        user_emb=xavier(ks[0], (n_users + 1, D)),
        item_emb=xavier(ks[1], (n_items + 1, D)),
        l1_w=l1_w, l1_b=l1_b, l2_w=l2_w, l2_b=l2_b,
        l3_w=l3_w, l3_b=l3_b, l4_w=l4_w, l4_b=l4_b,
        l5_w=l5_w, l5_b=l5_b, l6_w=l6_w, l6_b=l6_b,
        lstm_wih=jax.random.uniform(ks[8], (4 * D, D), jnp.float32, -lb, lb),
        lstm_whh=jax.random.uniform(ks[9], (4 * D, D), jnp.float32, -lb, lb),
        lstm_bih=jax.random.uniform(ks[10], (4 * D,), jnp.float32, -lb, lb),
        lstm_bhh=jax.random.uniform(ks[11], (4 * D,), jnp.float32, -lb, lb),
        lambdas=jnp.array([0.5, 0.5, 0.5, 0.5], jnp.float32),
        alpha=jnp.array([0.5], jnp.float32),
    )


def prepare_params(p, i_class):
    """One-time fusion: pre-transposed weights, bf16 copies at kernel boundaries,
    and the i_class one-hot contribution folded into a per-item class_bias."""
    D = p["user_emb"].shape[1]
    # l1 / l3 item-embedding part, stacked and pre-transposed: (D, 2D) bf16.
    w_item = jnp.concatenate([p["l1_w"][:, :D], p["l3_w"][:, :D]],
                             axis=0).T.astype(jnp.bfloat16)
    # Class one-hot contribution + linear biases, computed once: (Ni+1, 2D) f32.
    w_cls = jnp.concatenate([p["l1_w"][:, D:], p["l3_w"][:, D:]], axis=0).T
    b_item = jnp.concatenate([p["l1_b"], p["l3_b"]]).reshape(1, 2 * D)
    class_bias = i_class.astype(jnp.float32) @ w_cls + b_item
    return dict(
        user_emb=p["user_emb"], item_emb=p["item_emb"],
        item_emb_bf16=p["item_emb"].astype(jnp.bfloat16),
        item_w=w_item, class_bias=class_bias,
        head_w4=jnp.stack([p["l4_w"][0, :D], p["l4_w"][0, D:]]),   # (2, D)
        head_w6=jnp.stack([p["l6_w"][0, :D], p["l6_w"][0, D:]]),   # (2, D)
        head_b=jnp.concatenate([p["l4_b"], p["l6_b"]]),            # (2,)
        w2_t=p["l2_w"].T, b2=p["l2_b"].reshape(1, D),
        w5_t=p["l5_w"].T, b5=p["l5_b"].reshape(1, D),
        lstm_wih_t=p["lstm_wih"].T.astype(jnp.bfloat16),
        lstm_whh_t=p["lstm_whh"].T.astype(jnp.bfloat16),
        lstm_b=(p["lstm_bih"] + p["lstm_bhh"]).reshape(1, 4 * D),
        lambdas=p["lambdas"], alpha=p["alpha"],
    )


@functools.partial(jax.jit, static_argnames=("flag",))
def fuserec_forward(prep, users, items, labels, u_items, u_items_mask,
                    u_frids, u_frids_mask, u_frids_items, F_i, flag=0):
    k = K_FRIENDS
    B = users.shape[0]

    u = prep["user_emb"][users]                                    # (B, D)
    i_emb = prep["item_emb"][items]                                # (B, D)
    v = prep["user_emb"][u_frids]                                  # (B, k, D)

    # --- fused l1 + l3 over item_emb only (class one-hot folded into class_bias) ---
    ju_all, jv_all = fused_item_linear(prep["item_emb_bf16"], prep["item_w"],
                                       prep["class_bias"])        # 2 x (Ni+1, D) bf16

    # --- LSTM over the user's item sequence (time-major bf16 gather, hu only) ---
    ju_tbd = ju_all[u_items.T]                                     # (L, B, D) bf16
    last_t = (u_items_mask.astype(jnp.int32) - 1).reshape(B, 1)
    # TODO(synk): if real data allows u_items_mask == 0, hu stays 0 for that row
    # (the torch reference would index output[-1] / error there).
    hu = pallas_lstm(ju_tbd, last_t, prep["lstm_wih_t"], prep["lstm_whh_t"],
                     prep["lstm_b"])                               # (B, D) f32

    # --- friend-side representation ---
    jv = jv_all[u_frids_items]                                     # (B, k, L2, D) bf16
    pv = (jnp.sum(jv.astype(jnp.float32), axis=2)
          / u_frids_mask.astype(jnp.float32)[:, None, None])       # (B, k, D)

    Fi_1 = prep["item_emb"][F_i[:, 0, :]]                          # (B, k, D)
    Fi_2 = prep["item_emb"][F_i[:, 1, :]]

    # --- l4 / l6 heads, split-weight form (no heads_in broadcasts/concats) ---
    w4u, w4v = prep["head_w4"][0], prep["head_w4"][1]
    w6i, w6f = prep["head_w6"][0], prep["head_w6"][1]
    b4, b6 = prep["head_b"][0], prep["head_b"][1]
    at = jax.nn.leaky_relu((u @ w4u)[:, None]
                           + jnp.einsum("bkd,d->bk", v, w4v) + b4)
    bi = (i_emb @ w6i)[:, None]
    b1_logits = jax.nn.leaky_relu(bi + jnp.einsum("bkd,d->bk", Fi_1, w6f) + b6)
    b2_logits = jax.nn.leaky_relu(bi + jnp.einsum("bkd,d->bk", Fi_2, w6f) + b6)

    # softmax over the first u_frids_mask[b] friends, zeros for the rest
    valid = jnp.arange(k)[None, :] < u_frids_mask[:, None]
    auv = jax.nn.softmax(jnp.where(valid, at, -jnp.inf), axis=1)
    auv = jnp.where(valid, auv, 0.0)
    # TODO(synk): u_frids_mask == 0 would NaN here and in pv (torch reference too).
    su = jnp.sum(pv * auv[:, :, None], axis=1)                     # (B, D)

    # item-item attention (softmax over the batch dim, exactly as in torch)
    bij_1 = jax.nn.softmax(b1_logits, axis=0)[:, :, None]
    bij_2 = jax.nn.softmax(b2_logits, axis=0)[:, :, None]
    alpha = prep["alpha"][0]
    yi = (alpha * jnp.sum(bij_1 * Fi_1, axis=1)
          + (1.0 - alpha) * jnp.sum(bij_2 * Fi_2, axis=1))          # (B, D)

    # --- fused l2 + l5 + score epilogue ---
    rui = pallas_epilogue(prep["lambdas"], hu, su, i_emb, yi,
                          prep["w2_t"], prep["b2"], prep["w5_t"], prep["b5"])
    if flag == 1:
        return rui

    # nn.BCELoss (mean reduction)
    lab = labels.astype(jnp.float32)
    eps = 1e-12
    r = jnp.clip(rui, eps, 1.0 - eps)
    return -jnp.mean(lab * jnp.log(r) + (1.0 - lab) * jnp.log(1.0 - r))


# ---------------------------------- main ----------------------------------- #

if __name__ == "__main__":
    n_users, n_items = 31, 63
    D = 32            # embedding_dim
    C = 4             # number of item classes
    B = 8             # batch
    L = 8             # user item-sequence length
    L2 = 6            # items per friend
    k = K_FRIENDS

    key = jax.random.PRNGKey(0)
    kp, kd = jax.random.split(key)
    params = init_params(kp, n_users, n_items, D, C)

    # i_class: one-hot over (n_items + 1) rows, C classes (all classes present)
    i_class_list = jnp.arange(n_items + 1) % C
    i_class = jax.nn.one_hot(i_class_list, C, dtype=jnp.float32)
    prep = prepare_params(params, i_class)

    kk = jax.random.split(kd, 10)
    users = jax.random.randint(kk[0], (B,), 0, n_users + 1)
    items = jax.random.randint(kk[1], (B,), 0, n_items + 1)
    labels = jax.random.randint(kk[2], (B,), 0, 2)
    u_items = jax.random.randint(kk[3], (B, L), 0, n_items + 1)
    u_items_mask = jax.random.randint(kk[4], (B,), 1, L + 1)
    u_frids = jax.random.randint(kk[5], (B, k), 0, n_users + 1)
    u_frids_mask = jax.random.randint(kk[6], (B,), 1, k + 1)
    u_frids_items = jax.random.randint(kk[7], (B, k, L2), 0, n_items + 1)
    F_i = jax.random.randint(kk[8], (B, 2, k), 0, n_items + 1)

    rui = fuserec_forward(prep, users, items, labels, u_items, u_items_mask,
                          u_frids, u_frids_mask, u_frids_items, F_i, flag=1)
    loss = fuserec_forward(prep, users, items, labels, u_items, u_items_mask,
                           u_frids, u_frids_mask, u_frids_items, F_i, flag=0)
    jax.block_until_ready(rui)
    jax.block_until_ready(loss)
    assert rui.shape == (B,) and bool(jnp.all((rui >= 0) & (rui <= 1)))
    assert loss.shape == () and bool(jnp.isfinite(loss))
    print("KERNEL_OK")
</pallas_src>

<mosaic_0001>
module attributes {stable_mosaic.version = 11 : i64} {
  func.func @_item_linear_kernel(%arg0: i32, %arg1: memref<64x32xbf16, #tpu.memory_space<vmem>>, %arg2: memref<32x64xbf16, #tpu.memory_space<vmem>>, %arg3: memref<64x64xf32, #tpu.memory_space<vmem>>, %arg4: memref<64x32xbf16, #tpu.memory_space<vmem>>, %arg5: memref<64x32xbf16, #tpu.memory_space<vmem>>) attributes {dimension_semantics = [#tpu.dimension_semantics<parallel>], iteration_bounds = array<i64: 1>, scalar_prefetch = 0 : i64, scratch_operands = 0 : i64, tpu.core_type = #tpu.core_type<tc>, window_params = [{transform_indices = @transform_0, window_bounds = array<i64: 64, 32>}, {pipeline_mode = #tpu.pipeline_mode<synchronous>, transform_indices = @transform_1, window_bounds = array<i64: 32, 64>}, {transform_indices = @transform_2, window_bounds = array<i64: 64, 64>}, {transform_indices = @transform_3, window_bounds = array<i64: 64, 32>}, {transform_indices = @transform_4, window_bounds = array<i64: 64, 32>}]} {
    %c0 = arith.constant 0 : index
    %c0_0 = arith.constant 0 : index
    %0 = vector.load %arg1[%c0, %c0_0] : memref<64x32xbf16, #tpu.memory_space<vmem>>, vector<64x32xbf16>
    %c0_1 = arith.constant 0 : index
    %c0_2 = arith.constant 0 : index
    %1 = vector.load %arg2[%c0_1, %c0_2] : memref<32x64xbf16, #tpu.memory_space<vmem>>, vector<32x64xbf16>
    %cst = arith.constant dense<0.000000e+00> : vector<64x64xf32>
    %2 = tpu.matmul %0, %1, %cst {dimension_numbers = #tpu.dot_dimension_numbers<[1], [0], [0], [1], [0, 0, 1, 1], [], []>} : vector<64x32xbf16>, vector<32x64xbf16>, vector<64x64xf32> -> vector<64x64xf32>
    %c0_3 = arith.constant 0 : index
    %c0_4 = arith.constant 0 : index
    %3 = vector.load %arg3[%c0_3, %c0_4] : memref<64x64xf32, #tpu.memory_space<vmem>>, vector<64x64xf32>
    %4 = arith.addf %2, %3 : vector<64x64xf32>
    %5 = vector.extract_strided_slice %4 {offsets = [0, 0], sizes = [64, 32], strides = [1, 1]} : vector<64x64xf32> to vector<64x32xf32>
    %6 = arith.truncf %5 : vector<64x32xf32> to vector<64x32xbf16>
    %c0_5 = arith.constant 0 : index
    %c0_6 = arith.constant 0 : index
    %7 = vector.load %arg4[%c0_5, %c0_6] : memref<64x32xbf16, #tpu.memory_space<vmem>>, vector<64x32xbf16>
    tpu.vector_store %arg4[%c0_5, %c0_6], %6 {strides = array<i32>} : memref<64x32xbf16, #tpu.memory_space<vmem>>, vector<64x32xbf16>,
    %8 = vector.extract_strided_slice %4 {offsets = [0, 32], sizes = [64, 32], strides = [1, 1]} : vector<64x64xf32> to vector<64x32xf32>
    %9 = arith.truncf %8 : vector<64x32xf32> to vector<64x32xbf16>
    %c0_7 = arith.constant 0 : index
    %c0_8 = arith.constant 0 : index
    %10 = vector.load %arg5[%c0_7, %c0_8] : memref<64x32xbf16, #tpu.memory_space<vmem>>, vector<64x32xbf16>
    tpu.vector_store %arg5[%c0_7, %c0_8], %9 {strides = array<i32>} : memref<64x32xbf16, #tpu.memory_space<vmem>>, vector<64x32xbf16>,
    return
  }
  func.func @transform_0(%arg0: i32) -> (i32, i32) {
    %c0_i32 = arith.constant 0 : i32
    %c0_i32_0 = arith.constant 0 : i32
    return %arg0, %c0_i32 : i32, i32
  }
  func.func @transform_1(%arg0: i32) -> (i32, i32) {
    %c0_i32 = arith.constant 0 : i32
    %c0_i32_0 = arith.constant 0 : i32
    %c0_i32_1 = arith.constant 0 : i32
    return %c0_i32, %c0_i32_0 : i32, i32
  }
  func.func @transform_2(%arg0: i32) -> (i32, i32) {
    %c0_i32 = arith.constant 0 : i32
    %c0_i32_0 = arith.constant 0 : i32
    return %arg0, %c0_i32 : i32, i32
  }
  func.func @transform_3(%arg0: i32) -> (i32, i32) {
    %c0_i32 = arith.constant 0 : i32
    %c0_i32_0 = arith.constant 0 : i32
    return %arg0, %c0_i32 : i32, i32
  }
  func.func @transform_4(%arg0: i32) -> (i32, i32) {
    %c0_i32 = arith.constant 0 : i32
    %c0_i32_0 = arith.constant 0 : i32
    return %arg0, %c0_i32 : i32, i32
  }
}

module attributes {stable_mosaic.version = 11 : i64} {
  func.func @_lstm_kernel(%arg0: i32, %arg1: memref<8x1xi32, #tpu.memory_space<vmem>>, %arg2: memref<8x8x32xbf16, #tpu.memory_space<vmem>>, %arg3: memref<32x128xbf16, #tpu.memory_space<vmem>>, %arg4: memref<32x128xbf16, #tpu.memory_space<vmem>>, %arg5: memref<1x128xf32, #tpu.memory_space<vmem>>, %arg6: memref<8x32xf32, #tpu.memory_space<vmem>>) attributes {dimension_semantics = [#tpu.dimension_semantics<parallel>], iteration_bounds = array<i64: 1>, scalar_prefetch = 0 : i64, scratch_operands = 0 : i64, tpu.core_type = #tpu.core_type<tc>, window_params = [{transform_indices = @transform_0, window_bounds = array<i64: 8, 1>}, {transform_indices = @transform_1, window_bounds = array<i64: 8, 8, 32>}, {pipeline_mode = #tpu.pipeline_mode<synchronous>, transform_indices = @transform_2, window_bounds = array<i64: 32, 128>}, {pipeline_mode = #tpu.pipeline_mode<synchronous>, transform_indices = @transform_3, window_bounds = array<i64: 32, 128>}, {pipeline_mode = #tpu.pipeline_mode<synchronous>, transform_indices = @transform_4, window_bounds = array<i64: 1, 128>}, {transform_indices = @transform_5, window_bounds = array<i64: 8, 32>}]} {
    %c0 = arith.constant 0 : index
    %c0_0 = arith.constant 0 : index
    %0 = vector.load %arg1[%c0, %c0_0] : memref<8x1xi32, #tpu.memory_space<vmem>>, vector<8x1xi32>
    %c0_1 = arith.constant 0 : index
    %c0_2 = arith.constant 0 : index
    %1 = vector.load %arg5[%c0_1, %c0_2] : memref<1x128xf32, #tpu.memory_space<vmem>>, vector<1x128xf32>
    %c0_3 = arith.constant 0 : index
    %c0_4 = arith.constant 0 : index
    %2 = vector.load %arg3[%c0_3, %c0_4] : memref<32x128xbf16, #tpu.memory_space<vmem>>, vector<32x128xbf16>
    %c0_5 = arith.constant 0 : index
    %c0_6 = arith.constant 0 : index
    %3 = vector.load %arg4[%c0_5, %c0_6] : memref<32x128xbf16, #tpu.memory_space<vmem>>, vector<32x128xbf16>
    %cst = arith.constant 0.000000e+00 : f32
    %4 = vector.broadcast %cst : f32 to vector<8x32xf32>
    %c0_i32 = arith.constant 0 : i32
    %5 = arith.index_cast %c0_i32 : i32 to index
    %c0_7 = arith.constant 0 : index
    %c0_8 = arith.constant 0 : index
    %6 = vector.load %arg2[%5, %c0_7, %c0_8] : memref<8x8x32xbf16, #tpu.memory_space<vmem>>, vector<1x8x32xbf16>
    %7 = vector.shape_cast %6 : vector<1x8x32xbf16> to vector<8x32xbf16>
    %cst_9 = arith.constant dense<0.000000e+00> : vector<8x128xf32>
    %8 = tpu.matmul %7, %2, %cst_9 {dimension_numbers = #tpu.dot_dimension_numbers<[1], [0], [0], [1], [0, 0, 1, 1], [], []>} : vector<8x32xbf16>, vector<32x128xbf16>, vector<8x128xf32> -> vector<8x128xf32>
    %9 = arith.truncf %4 : vector<8x32xf32> to vector<8x32xbf16>
    %cst_10 = arith.constant dense<0.000000e+00> : vector<8x128xf32>
    %10 = tpu.matmul %9, %3, %cst_10 {dimension_numbers = #tpu.dot_dimension_numbers<[1], [0], [0], [1], [0, 0, 1, 1], [], []>} : vector<8x32xbf16>, vector<32x128xbf16>, vector<8x128xf32> -> vector<8x128xf32>
    %11 = arith.addf %8, %10 : vector<8x128xf32>
    %12 = vector.broadcast %1 : vector<1x128xf32> to vector<8x128xf32>
    %13 = arith.addf %11, %12 : vector<8x128xf32>
    %14 = arith.negf %13 : vector<8x128xf32>
    %15 = math.exp %14 : vector<8x128xf32>
    %cst_11 = arith.constant 1.000000e+00 : f32
    %16 = vector.broadcast %cst_11 : f32 to vector<8x128xf32>
    %17 = arith.addf %16, %15 : vector<8x128xf32>
    %18 = arith.divf %16, %17 : vector<8x128xf32>
    %19 = math.tanh %13 : vector<8x128xf32>
    %20 = vector.extract_strided_slice %18 {offsets = [0, 0], sizes = [8, 32], strides = [1, 1]} : vector<8x128xf32> to vector<8x32xf32>
    %21 = vector.extract_strided_slice %18 {offsets = [0, 32], sizes = [8, 32], strides = [1, 1]} : vector<8x128xf32> to vector<8x32xf32>
    %22 = vector.extract_strided_slice %19 {offsets = [0, 64], sizes = [8, 32], strides = [1, 1]} : vector<8x128xf32> to vector<8x32xf32>
    %23 = vector.extract_strided_slice %18 {offsets = [0, 96], sizes = [8, 32], strides = [1, 1]} : vector<8x128xf32> to vector<8x32xf32>
    %24 = arith.mulf %21, %4 : vector<8x32xf32>
    %25 = arith.mulf %20, %22 : vector<8x32xf32>
    %26 = arith.addf %24, %25 : vector<8x32xf32>
    %27 = math.tanh %26 : vector<8x32xf32>
    %28 = arith.mulf %23, %27 : vector<8x32xf32>
    %29 = vector.broadcast %c0_i32 : i32 to vector<8x1xi32>
    %30 = arith.cmpi eq, %0, %29 : vector<8x1xi32>
    %31 = vector.shape_cast %30 : vector<8x1xi1> to vector<8x1xi1>
    %32 = vector.broadcast %31 : vector<8x1xi1> to vector<8x32xi1>
    %33 = arith.select %32, %28, %4 : vector<8x32xi1>, vector<8x32xf32>
    %c1_i32 = arith.constant 1 : i32
    %34 = arith.index_cast %c1_i32 : i32 to index
    %c0_12 = arith.constant 0 : index
    %c0_13 = arith.constant 0 : index
    %35 = vector.load %arg2[%34, %c0_12, %c0_13] : memref<8x8x32xbf16, #tpu.memory_space<vmem>>, vector<1x8x32xbf16>
    %36 = vector.shape_cast %35 : vector<1x8x32xbf16> to vector<8x32xbf16>
    %cst_14 = arith.constant dense<0.000000e+00> : vector<8x128xf32>
    %37 = tpu.matmul %36, %2, %cst_14 {dimension_numbers = #tpu.dot_dimension_numbers<[1], [0], [0], [1], [0, 0, 1, 1], [], []>} : vector<8x32xbf16>, vector<32x128xbf16>, vector<8x128xf32> -> vector<8x128xf32>
    %38 = arith.truncf %28 : vector<8x32xf32> to vector<8x32xbf16>
    %cst_15 = arith.constant dense<0.000000e+00> : vector<8x128xf32>
    %39 = tpu.matmul %38, %3, %cst_15 {dimension_numbers = #tpu.dot_dimension_numbers<[1], [0], [0], [1], [0, 0, 1, 1], [], []>} : vector<8x32xbf16>, vector<32x128xbf16>, vector<8x128xf32> -> vector<8x128xf32>
    %40 = arith.addf %37, %39 : vector<8x128xf32>
    %41 = vector.broadcast %1 : vector<1x128xf32> to vector<8x128xf32>
    %42 = arith.addf %40, %41 : vector<8x128xf32>
    %43 = arith.negf %42 : vector<8x128xf32>
    %44 = math.exp %43 : vector<8x128xf32>
    %cst_16 = arith.constant 1.000000e+00 : f32
    %45 = vector.broadcast %cst_16 : f32 to vector<8x128xf32>
    %46 = arith.addf %45, %44 : vector<8x128xf32>
    %47 = arith.divf %45, %46 : vector<8x128xf32>
    %48 = math.tanh %42 : vector<8x128xf32>
    %49 = vector.extract_strided_slice %47 {offsets = [0, 0], sizes = [8, 32], strides = [1, 1]} : vector<8x128xf32> to vector<8x32xf32>
    %50 = vector.extract_strided_slice %47 {offsets = [0, 32], sizes = [8, 32], strides = [1, 1]} : vector<8x128xf32> to vector<8x32xf32>
    %51 = vector.extract_strided_slice %48 {offsets = [0, 64], sizes = [8, 32], strides = [1, 1]} : vector<8x128xf32> to vector<8x32xf32>
    %52 = vector.extract_strided_slice %47 {offsets = [0, 96], sizes = [8, 32], strides = [1, 1]} : vector<8x128xf32> to vector<8x32xf32>
    %53 = arith.mulf %50, %26 : vector<8x32xf32>
    %54 = arith.mulf %49, %51 : vector<8x32xf32>
    %55 = arith.addf %53, %54 : vector<8x32xf32>
    %56 = math.tanh %55 : vector<8x32xf32>
    %57 = arith.mulf %52, %56 : vector<8x32xf32>
    %58 = vector.broadcast %c1_i32 : i32 to vector<8x1xi32>
    %59 = arith.cmpi eq, %0, %58 : vector<8x1xi32>
    %60 = vector.shape_cast %59 : vector<8x1xi1> to vector<8x1xi1>
    %61 = vector.broadcast %60 : vector<8x1xi1> to vector<8x32xi1>
    %62 = arith.select %61, %57, %33 : vector<8x32xi1>, vector<8x32xf32>
    %c2_i32 = arith.constant 2 : i32
    %63 = arith.index_cast %c2_i32 : i32 to index
    %c0_17 = arith.constant 0 : index
    %c0_18 = arith.constant 0 : index
    %64 = vector.load %arg2[%63, %c0_17, %c0_18] : memref<8x8x32xbf16, #tpu.memory_space<vmem>>, vector<1x8x32xbf16>
    %65 = vector.shape_cast %64 : vector<1x8x32xbf16> to vector<8x32xbf16>
    %cst_19 = arith.constant dense<0.000000e+00> : vector<8x128xf32>
    %66 = tpu.matmul %65, %2, %cst_19 {dimension_numbers = #tpu.dot_dimension_numbers<[1], [0], [0], [1], [0, 0, 1, 1], [], []>} : vector<8x32xbf16>, vector<32x128xbf16>, vector<8x128xf32> -> vector<8x128xf32>
    %67 = arith.truncf %57 : vector<8x32xf32> to vector<8x32xbf16>
    %cst_20 = arith.constant dense<0.000000e+00> : vector<8x128xf32>
    %68 = tpu.matmul %67, %3, %cst_20 {dimension_numbers = #tpu.dot_dimension_numbers<[1], [0], [0], [1], [0, 0, 1, 1], [], []>} : vector<8x32xbf16>, vector<32x128xbf16>, vector<8x128xf32> -> vector<8x128xf32>
    %69 = arith.addf %66, %68 : vector<8x128xf32>
    %70 = vector.broadcast %1 : vector<1x128xf32> to vector<8x128xf32>
    %71 = arith.addf %69, %70 : vector<8x128xf32>
    %72 = arith.negf %71 : vector<8x128xf32>
    %73 = math.exp %72 : vector<8x128xf32>
    %cst_21 = arith.constant 1.000000e+00 : f32
    %74 = vector.broadcast %cst_21 : f32 to vector<8x128xf32>
    %75 = arith.addf %74, %73 : vector<8x128xf32>
    %76 = arith.divf %74, %75 : vector<8x128xf32>
    %77 = math.tanh %71 : vector<8x128xf32>
    %78 = vector.extract_strided_slice %76 {offsets = [0, 0], sizes = [8, 32], strides = [1, 1]} : vector<8x128xf32> to vector<8x32xf32>
    %79 = vector.extract_strided_slice %76 {offsets = [0, 32], sizes = [8, 32], strides = [1, 1]} : vector<8x128xf32> to vector<8x32xf32>
    %80 = vector.extract_strided_slice %77 {offsets = [0, 64], sizes = [8, 32], strides = [1, 1]} : vector<8x128xf32> to vector<8x32xf32>
    %81 = vector.extract_strided_slice %76 {offsets = [0, 96], sizes = [8, 32], strides = [1, 1]} : vector<8x128xf32> to vector<8x32xf32>
    %82 = arith.mulf %79, %55 : vector<8x32xf32>
    %83 = arith.mulf %78, %80 : vector<8x32xf32>
    %84 = arith.addf %82, %83 : vector<8x32xf32>
    %85 = math.tanh %84 : vector<8x32xf32>
    %86 = arith.mulf %81, %85 : vector<8x32xf32>
    %87 = vector.broadcast %c2_i32 : i32 to vector<8x1xi32>
    %88 = arith.cmpi eq, %0, %87 : vector<8x1xi32>
    %89 = vector.shape_cast %88 : vector<8x1xi1> to vector<8x1xi1>
    %90 = vector.broadcast %89 : vector<8x1xi1> to vector<8x32xi1>
    %91 = arith.select %90, %86, %62 : vector<8x32xi1>, vector<8x32xf32>
    %c3_i32 = arith.constant 3 : i32
    %92 = arith.index_cast %c3_i32 : i32 to index
    %c0_22 = arith.constant 0 : index
    %c0_23 = arith.constant 0 : index
    %93 = vector.load %arg2[%92, %c0_22, %c0_23] : memref<8x8x32xbf16, #tpu.memory_space<vmem>>, vector<1x8x32xbf16>
    %94 = vector.shape_cast %93 : vector<1x8x32xbf16> to vector<8x32xbf16>
    %cst_24 = arith.constant dense<0.000000e+00> : vector<8x128xf32>
    %95 = tpu.matmul %94, %2, %cst_24 {dimension_numbers = #tpu.dot_dimension_numbers<[1], [0], [0], [1], [0, 0, 1, 1], [], []>} : vector<8x32xbf16>, vector<32x128xbf16>, vector<8x128xf32> -> vector<8x128xf32>
    %96 = arith.truncf %86 : vector<8x32xf32> to vector<8x32xbf16>
    %cst_25 = arith.constant dense<0.000000e+00> : vector<8x128xf32>
    %97 = tpu.matmul %96, %3, %cst_25 {dimension_numbers = #tpu.dot_dimension_numbers<[1], [0], [0], [1], [0, 0, 1, 1], [], []>} : vector<8x32xbf16>, vector<32x128xbf16>, vector<8x128xf32> -> vector<8x128xf32>
    %98 = arith.addf %95, %97 : vector<8x128xf32>
    %99 = vector.broadcast %1 : vector<1x128xf32> to vector<8x128xf32>
    %100 = arith.addf %98, %99 : vector<8x128xf32>
    %101 = arith.negf %100 : vector<8x128xf32>
    %102 = math.exp %101 : vector<8x128xf32>
    %cst_26 = arith.constant 1.000000e+00 : f32
    %103 = vector.broadcast %cst_26 : f32 to vector<8x128xf32>
    %104 = arith.addf %103, %102 : vector<8x128xf32>
    %105 = arith.divf %103, %104 : vector<8x128xf32>
    %106 = math.tanh %100 : vector<8x128xf32>
    %107 = vector.extract_strided_slice %105 {offsets = [0, 0], sizes = [8, 32], strides = [1, 1]} : vector<8x128xf32> to vector<8x32xf32>
    %108 = vector.extract_strided_slice %105 {offsets = [0, 32], sizes = [8, 32], strides = [1, 1]} : vector<8x128xf32> to vector<8x32xf32>
    %109 = vector.extract_strided_slice %106 {offsets = [0, 64], sizes = [8, 32], strides = [1, 1]} : vector<8x128xf32> to vector<8x32xf32>
    %110 = vector.extract_strided_slice %105 {offsets = [0, 96], sizes = [8, 32], strides = [1, 1]} : vector<8x128xf32> to vector<8x32xf32>
    %111 = arith.mulf %108, %84 : vector<8x32xf32>
    %112 = arith.mulf %107, %109 : vector<8x32xf32>
    %113 = arith.addf %111, %112 : vector<8x32xf32>
    %114 = math.tanh %113 : vector<8x32xf32>
    %115 = arith.mulf %110, %114 : vector<8x32xf32>
    %116 = vector.broadcast %c3_i32 : i32 to vector<8x1xi32>
    %117 = arith.cmpi eq, %0, %116 : vector<8x1xi32>
    %118 = vector.shape_cast %117 : vector<8x1xi1> to vector<8x1xi1>
    %119 = vector.broadcast %118 : vector<8x1xi1> to vector<8x32xi1>
    %120 = arith.select %119, %115, %91 : vector<8x32xi1>, vector<8x32xf32>
    %c4_i32 = arith.constant 4 : i32
    %121 = arith.index_cast %c4_i32 : i32 to index
    %c0_27 = arith.constant 0 : index
    %c0_28 = arith.constant 0 : index
    %122 = vector.load %arg2[%121, %c0_27, %c0_28] : memref<8x8x32xbf16, #tpu.memory_space<vmem>>, vector<1x8x32xbf16>
    %123 = vector.shape_cast %122 : vector<1x8x32xbf16> to vector<8x32xbf16>
    %cst_29 = arith.constant dense<0.000000e+00> : vector<8x128xf32>
    %124 = tpu.matmul %123, %2, %cst_29 {dimension_numbers = #tpu.dot_dimension_numbers<[1], [0], [0], [1], [0, 0, 1, 1], [], []>} : vector<8x32xbf16>, vector<32x128xbf16>, vector<8x128xf32> -> vector<8x128xf32>
    %125 = arith.truncf %115 : vector<8x32xf32> to vector<8x32xbf16>
    %cst_30 = arith.constant dense<0.000000e+00> : vector<8x128xf32>
    %126 = tpu.matmul %125, %3, %cst_30 {dimension_numbers = #tpu.dot_dimension_numbers<[1], [0], [0], [1], [0, 0, 1, 1], [], []>} : vector<8x32xbf16>, vector<32x128xbf16>, vector<8x128xf32> -> vector<8x128xf32>
    %127 = arith.addf %124, %126 : vector<8x128xf32>
    %128 = vector.broadcast %1 : vector<1x128xf32> to vector<8x128xf32>
    %129 = arith.addf %127, %128 : vector<8x128xf32>
    %130 = arith.negf %129 : vector<8x128xf32>
    %131 = math.exp %130 : vector<8x128xf32>
    %cst_31 = arith.constant 1.000000e+00 : f32
    %132 = vector.broadcast %cst_31 : f32 to vector<8x128xf32>
    %133 = arith.addf %132, %131 : vector<8x128xf32>
    %134 = arith.divf %132, %133 : vector<8x128xf32>
    %135 = math.tanh %129 : vector<8x128xf32>
    %136 = vector.extract_strided_slice %134 {offsets = [0, 0], sizes = [8, 32], strides = [1, 1]} : vector<8x128xf32> to vector<8x32xf32>
    %137 = vector.extract_strided_slice %134 {offsets = [0, 32], sizes = [8, 32], strides = [1, 1]} : vector<8x128xf32> to vector<8x32xf32>
    %138 = vector.extract_strided_slice %135 {offsets = [0, 64], sizes = [8, 32], strides = [1, 1]} : vector<8x128xf32> to vector<8x32xf32>
    %139 = vector.extract_strided_slice %134 {offsets = [0, 96], sizes = [8, 32], strides = [1, 1]} : vector<8x128xf32> to vector<8x32xf32>
    %140 = arith.mulf %137, %113 : vector<8x32xf32>
    %141 = arith.mulf %136, %138 : vector<8x32xf32>
    %142 = arith.addf %140, %141 : vector<8x32xf32>
    %143 = math.tanh %142 : vector<8x32xf32>
    %144 = arith.mulf %139, %143 : vector<8x32xf32>
    %145 = vector.broadcast %c4_i32 : i32 to vector<8x1xi32>
    %146 = arith.cmpi eq, %0, %145 : vector<8x1xi32>
    %147 = vector.shape_cast %146 : vector<8x1xi1> to vector<8x1xi1>
    %148 = vector.broadcast %147 : vector<8x1xi1> to vector<8x32xi1>
    %149 = arith.select %148, %144, %120 : vector<8x32xi1>, vector<8x32xf32>
    %c5_i32 = arith.constant 5 : i32
    %150 = arith.index_cast %c5_i32 : i32 to index
    %c0_32 = arith.constant 0 : index
    %c0_33 = arith.constant 0 : index
    %151 = vector.load %arg2[%150, %c0_32, %c0_33] : memref<8x8x32xbf16, #tpu.memory_space<vmem>>, vector<1x8x32xbf16>
    %152 = vector.shape_cast %151 : vector<1x8x32xbf16> to vector<8x32xbf16>
    %cst_34 = arith.constant dense<0.000000e+00> : vector<8x128xf32>
    %153 = tpu.matmul %152, %2, %cst_34 {dimension_numbers = #tpu.dot_dimension_numbers<[1], [0], [0], [1], [0, 0, 1, 1], [], []>} : vector<8x32xbf16>, vector<32x128xbf16>, vector<8x128xf32> -> vector<8x128xf32>
    %154 = arith.truncf %144 : vector<8x32xf32> to vector<8x32xbf16>
    %cst_35 = arith.constant dense<0.000000e+00> : vector<8x128xf32>
    %155 = tpu.matmul %154, %3, %cst_35 {dimension_numbers = #tpu.dot_dimension_numbers<[1], [0], [0], [1], [0, 0, 1, 1], [], []>} : vector<8x32xbf16>, vector<32x128xbf16>, vector<8x128xf32> -> vector<8x128xf32>
    %156 = arith.addf %153, %155 : vector<8x128xf32>
    %157 = vector.broadcast %1 : vector<1x128xf32> to vector<8x128xf32>
    %158 = arith.addf %156, %157 : vector<8x128xf32>
    %159 = arith.negf %158 : vector<8x128xf32>
    %160 = math.exp %159 : vector<8x128xf32>
    %cst_36 = arith.constant 1.000000e+00 : f32
    %161 = vector.broadcast %cst_36 : f32 to vector<8x128xf32>
    %162 = arith.addf %161, %160 : vector<8x128xf32>
    %163 = arith.divf %161, %162 : vector<8x128xf32>
    %164 = math.tanh %158 : vector<8x128xf32>
    %165 = vector.extract_strided_slice %163 {offsets = [0, 0], sizes = [8, 32], strides = [1, 1]} : vector<8x128xf32> to vector<8x32xf32>
    %166 = vector.extract_strided_slice %163 {offsets = [0, 32], sizes = [8, 32], strides = [1, 1]} : vector<8x128xf32> to vector<8x32xf32>
    %167 = vector.extract_strided_slice %164 {offsets = [0, 64], sizes = [8, 32], strides = [1, 1]} : vector<8x128xf32> to vector<8x32xf32>
    %168 = vector.extract_strided_slice %163 {offsets = [0, 96], sizes = [8, 32], strides = [1, 1]} : vector<8x128xf32> to vector<8x32xf32>
    %169 = arith.mulf %166, %142 : vector<8x32xf32>
    %170 = arith.mulf %165, %167 : vector<8x32xf32>
    %171 = arith.addf %169, %170 : vector<8x32xf32>
    %172 = math.tanh %171 : vector<8x32xf32>
    %173 = arith.mulf %168, %172 : vector<8x32xf32>
    %174 = vector.broadcast %c5_i32 : i32 to vector<8x1xi32>
    %175 = arith.cmpi eq, %0, %174 : vector<8x1xi32>
    %176 = vector.shape_cast %175 : vector<8x1xi1> to vector<8x1xi1>
    %177 = vector.broadcast %176 : vector<8x1xi1> to vector<8x32xi1>
    %178 = arith.select %177, %173, %149 : vector<8x32xi1>, vector<8x32xf32>
    %c6_i32 = arith.constant 6 : i32
    %179 = arith.index_cast %c6_i32 : i32 to index
    %c0_37 = arith.constant 0 : index
    %c0_38 = arith.constant 0 : index
    %180 = vector.load %arg2[%179, %c0_37, %c0_38] : memref<8x8x32xbf16, #tpu.memory_space<vmem>>, vector<1x8x32xbf16>
    %181 = vector.shape_cast %180 : vector<1x8x32xbf16> to vector<8x32xbf16>
    %cst_39 = arith.constant dense<0.000000e+00> : vector<8x128xf32>
    %182 = tpu.matmul %181, %2, %cst_39 {dimension_numbers = #tpu.dot_dimension_numbers<[1], [0], [0], [1], [0, 0, 1, 1], [], []>} : vector<8x32xbf16>, vector<32x128xbf16>, vector<8x128xf32> -> vector<8x128xf32>
    %183 = arith.truncf %173 : vector<8x32xf32> to vector<8x32xbf16>
    %cst_40 = arith.constant dense<0.000000e+00> : vector<8x128xf32>
    %184 = tpu.matmul %183, %3, %cst_40 {dimension_numbers = #tpu.dot_dimension_numbers<[1], [0], [0], [1], [0, 0, 1, 1], [], []>} : vector<8x32xbf16>, vector<32x128xbf16>, vector<8x128xf32> -> vector<8x128xf32>
    %185 = arith.addf %182, %184 : vector<8x128xf32>
    %186 = vector.broadcast %1 : vector<1x128xf32> to vector<8x128xf32>
    %187 = arith.addf %185, %186 : vector<8x128xf32>
    %188 = arith.negf %187 : vector<8x128xf32>
    %189 = math.exp %188 : vector<8x128xf32>
    %cst_41 = arith.constant 1.000000e+00 : f32
    %190 = vector.broadcast %cst_41 : f32 to vector<8x128xf32>
    %191 = arith.addf %190, %189 : vector<8x128xf32>
    %192 = arith.divf %190, %191 : vector<8x128xf32>
    %193 = math.tanh %187 : vector<8x128xf32>
    %194 = vector.extract_strided_slice %192 {offsets = [0, 0], sizes = [8, 32], strides = [1, 1]} : vector<8x128xf32> to vector<8x32xf32>
    %195 = vector.extract_strided_slice %192 {offsets = [0, 32], sizes = [8, 32], strides = [1, 1]} : vector<8x128xf32> to vector<8x32xf32>
    %196 = vector.extract_strided_slice %193 {offsets = [0, 64], sizes = [8, 32], strides = [1, 1]} : vector<8x128xf32> to vector<8x32xf32>
    %197 = vector.extract_strided_slice %192 {offsets = [0, 96], sizes = [8, 32], strides = [1, 1]} : vector<8x128xf32> to vector<8x32xf32>
    %198 = arith.mulf %195, %171 : vector<8x32xf32>
    %199 = arith.mulf %194, %196 : vector<8x32xf32>
    %200 = arith.addf %198, %199 : vector<8x32xf32>
    %201 = math.tanh %200 : vector<8x32xf32>
    %202 = arith.mulf %197, %201 : vector<8x32xf32>
    %203 = vector.broadcast %c6_i32 : i32 to vector<8x1xi32>
    %204 = arith.cmpi eq, %0, %203 : vector<8x1xi32>
    %205 = vector.shape_cast %204 : vector<8x1xi1> to vector<8x1xi1>
    %206 = vector.broadcast %205 : vector<8x1xi1> to vector<8x32xi1>
    %207 = arith.select %206, %202, %178 : vector<8x32xi1>, vector<8x32xf32>
    %c7_i32 = arith.constant 7 : i32
    %208 = arith.index_cast %c7_i32 : i32 to index
    %c0_42 = arith.constant 0 : index
    %c0_43 = arith.constant 0 : index
    %209 = vector.load %arg2[%208, %c0_42, %c0_43] : memref<8x8x32xbf16, #tpu.memory_space<vmem>>, vector<1x8x32xbf16>
    %210 = vector.shape_cast %209 : vector<1x8x32xbf16> to vector<8x32xbf16>
    %cst_44 = arith.constant dense<0.000000e+00> : vector<8x128xf32>
    %211 = tpu.matmul %210, %2, %cst_44 {dimension_numbers = #tpu.dot_dimension_numbers<[1], [0], [0], [1], [0, 0, 1, 1], [], []>} : vector<8x32xbf16>, vector<32x128xbf16>, vector<8x128xf32> -> vector<8x128xf32>
    %212 = arith.truncf %202 : vector<8x32xf32> to vector<8x32xbf16>
    %cst_45 = arith.constant dense<0.000000e+00> : vector<8x128xf32>
    %213 = tpu.matmul %212, %3, %cst_45 {dimension_numbers = #tpu.dot_dimension_numbers<[1], [0], [0], [1], [0, 0, 1, 1], [], []>} : vector<8x32xbf16>, vector<32x128xbf16>, vector<8x128xf32> -> vector<8x128xf32>
    %214 = arith.addf %211, %213 : vector<8x128xf32>
    %215 = vector.broadcast %1 : vector<1x128xf32> to vector<8x128xf32>
    %216 = arith.addf %214, %215 : vector<8x128xf32>
    %217 = arith.negf %216 : vector<8x128xf32>
    %218 = math.exp %217 : vector<8x128xf32>
    %cst_46 = arith.constant 1.000000e+00 : f32
    %219 = vector.broadcast %cst_46 : f32 to vector<8x128xf32>
    %220 = arith.addf %219, %218 : vector<8x128xf32>
    %221 = arith.divf %219, %220 : vector<8x128xf32>
    %222 = math.tanh %216 : vector<8x128xf32>
    %223 = vector.extract_strided_slice %221 {offsets = [0, 0], sizes = [8, 32], strides = [1, 1]} : vector<8x128xf32> to vector<8x32xf32>
    %224 = vector.extract_strided_slice %221 {offsets = [0, 32], sizes = [8, 32], strides = [1, 1]} : vector<8x128xf32> to vector<8x32xf32>
    %225 = vector.extract_strided_slice %222 {offsets = [0, 64], sizes = [8, 32], strides = [1, 1]} : vector<8x128xf32> to vector<8x32xf32>
    %226 = vector.extract_strided_slice %221 {offsets = [0, 96], sizes = [8, 32], strides = [1, 1]} : vector<8x128xf32> to vector<8x32xf32>
    %227 = arith.mulf %224, %200 : vector<8x32xf32>
    %228 = arith.mulf %223, %225 : vector<8x32xf32>
    %229 = arith.addf %227, %228 : vector<8x32xf32>
    %230 = math.tanh %229 : vector<8x32xf32>
    %231 = arith.mulf %226, %230 : vector<8x32xf32>
    %232 = vector.broadcast %c7_i32 : i32 to vector<8x1xi32>
    %233 = arith.cmpi eq, %0, %232 : vector<8x1xi32>
    %234 = vector.shape_cast %233 : vector<8x1xi1> to vector<8x1xi1>
    %235 = vector.broadcast %234 : vector<8x1xi1> to vector<8x32xi1>
    %236 = arith.select %235, %231, %207 : vector<8x32xi1>, vector<8x32xf32>
    %c8_i32 = arith.constant 8 : i32
    %c0_47 = arith.constant 0 : index
    %c0_48 = arith.constant 0 : index
    %237 = vector.load %arg6[%c0_47, %c0_48] : memref<8x32xf32, #tpu.memory_space<vmem>>, vector<8x32xf32>
    tpu.vector_store %arg6[%c0_47, %c0_48], %236 {strides = array<i32>} : memref<8x32xf32, #tpu.memory_space<vmem>>, vector<8x32xf32>,
    return
  }
  func.func @transform_0(%arg0: i32) -> (i32, i32) {
    %c0_i32 = arith.constant 0 : i32
    %c0_i32_0 = arith.constant 0 : i32
    return %arg0, %c0_i32 : i32, i32
  }
  func.func @transform_1(%arg0: i32) -> (i32, i32, i32) {
    %c0_i32 = arith.constant 0 : i32
    %c0_i32_0 = arith.constant 0 : i32
    %c0_i32_1 = arith.constant 0 : i32
    return %c0_i32, %arg0, %c0_i32_0 : i32, i32, i32
  }
  func.func @transform_2(%arg0: i32) -> (i32, i32) {
    %c0_i32 = arith.constant 0 : i32
    %c0_i32_0 = arith.constant 0 : i32
    %c0_i32_1 = arith.constant 0 : i32
    return %c0_i32, %c0_i32_0 : i32, i32
  }
  func.func @transform_3(%arg0: i32) -> (i32, i32) {
    %c0_i32 = arith.constant 0 : i32
    %c0_i32_0 = arith.constant 0 : i32
    %c0_i32_1 = arith.constant 0 : i32
    return %c0_i32, %c0_i32_0 : i32, i32
  }
  func.func @transform_4(%arg0: i32) -> (i32, i32) {
    %c0_i32 = arith.constant 0 : i32
    %c0_i32_0 = arith.constant 0 : i32
    %c0_i32_1 = arith.constant 0 : i32
    return %c0_i32, %c0_i32_0 : i32, i32
  }
  func.func @transform_5(%arg0: i32) -> (i32, i32) {
    %c0_i32 = arith.constant 0 : i32
    %c0_i32_0 = arith.constant 0 : i32
    return %arg0, %c0_i32 : i32, i32
  }
}

module attributes {stable_mosaic.version = 11 : i64} {
  func.func @_epilogue_kernel(%arg0: memref<4xf32, #tpu.memory_space<smem>>, %arg1: memref<8x32xf32, #tpu.memory_space<vmem>>, %arg2: memref<8x32xf32, #tpu.memory_space<vmem>>, %arg3: memref<8x32xf32, #tpu.memory_space<vmem>>, %arg4: memref<8x32xf32, #tpu.memory_space<vmem>>, %arg5: memref<96x32xf32, #tpu.memory_space<vmem>>, %arg6: memref<1x32xf32, #tpu.memory_space<vmem>>, %arg7: memref<96x32xf32, #tpu.memory_space<vmem>>, %arg8: memref<1x32xf32, #tpu.memory_space<vmem>>, %arg9: memref<8x1xf32, #tpu.memory_space<vmem>>) attributes {dimension_semantics = [], scalar_prefetch = 0 : i64, scratch_operands = 0 : i64, tpu.core_type = #tpu.core_type<tc>} {
    %c0 = arith.constant 0 : index
    %c0_0 = arith.constant 0 : index
    %0 = vector.load %arg1[%c0, %c0_0] : memref<8x32xf32, #tpu.memory_space<vmem>>, vector<8x32xf32>
    %c0_1 = arith.constant 0 : index
    %c0_2 = arith.constant 0 : index
    %1 = vector.load %arg2[%c0_1, %c0_2] : memref<8x32xf32, #tpu.memory_space<vmem>>, vector<8x32xf32>
    %c0_3 = arith.constant 0 : index
    %c0_4 = arith.constant 0 : index
    %2 = vector.load %arg3[%c0_3, %c0_4] : memref<8x32xf32, #tpu.memory_space<vmem>>, vector<8x32xf32>
    %c0_5 = arith.constant 0 : index
    %c0_6 = arith.constant 0 : index
    %3 = vector.load %arg4[%c0_5, %c0_6] : memref<8x32xf32, #tpu.memory_space<vmem>>, vector<8x32xf32>
    %c0_7 = arith.constant 0 : index
    %c0_8 = arith.constant 0 : index
    %4 = vector.load %arg5[%c0_7, %c0_8] : memref<96x32xf32, #tpu.memory_space<vmem>>, vector<32x32xf32>
    %cst = arith.constant dense<0.000000e+00> : vector<8x32xf32>
    %5 = tpu.matmul %0, %4, %cst {dimension_numbers = #tpu.dot_dimension_numbers<[1], [0], [0], [1], [0, 0, 1, 1], [], []>} : vector<8x32xf32>, vector<32x32xf32>, vector<8x32xf32> -> vector<8x32xf32>
    %c32 = arith.constant 32 : index
    %c0_9 = arith.constant 0 : index
    %6 = vector.load %arg5[%c32, %c0_9] : memref<96x32xf32, #tpu.memory_space<vmem>>, vector<32x32xf32>
    %cst_10 = arith.constant dense<0.000000e+00> : vector<8x32xf32>
    %7 = tpu.matmul %2, %6, %cst_10 {dimension_numbers = #tpu.dot_dimension_numbers<[1], [0], [0], [1], [0, 0, 1, 1], [], []>} : vector<8x32xf32>, vector<32x32xf32>, vector<8x32xf32> -> vector<8x32xf32>
    %8 = arith.addf %5, %7 : vector<8x32xf32>
    %9 = arith.mulf %0, %2 : vector<8x32xf32>
    %c64 = arith.constant 64 : index
    %c0_11 = arith.constant 0 : index
    %10 = vector.load %arg5[%c64, %c0_11] : memref<96x32xf32, #tpu.memory_space<vmem>>, vector<32x32xf32>
    %cst_12 = arith.constant dense<0.000000e+00> : vector<8x32xf32>
    %11 = tpu.matmul %9, %10, %cst_12 {dimension_numbers = #tpu.dot_dimension_numbers<[1], [0], [0], [1], [0, 0, 1, 1], [], []>} : vector<8x32xf32>, vector<32x32xf32>, vector<8x32xf32> -> vector<8x32xf32>
    %12 = arith.addf %8, %11 : vector<8x32xf32>
    %c0_13 = arith.constant 0 : index
    %c0_14 = arith.constant 0 : index
    %13 = vector.load %arg6[%c0_13, %c0_14] : memref<1x32xf32, #tpu.memory_space<vmem>>, vector<1x32xf32>
    %14 = vector.broadcast %13 : vector<1x32xf32> to vector<8x32xf32>
    %15 = arith.addf %12, %14 : vector<8x32xf32>
    %c0_15 = arith.constant 0 : index
    %c0_16 = arith.constant 0 : index
    %16 = vector.load %arg7[%c0_15, %c0_16] : memref<96x32xf32, #tpu.memory_space<vmem>>, vector<32x32xf32>
    %cst_17 = arith.constant dense<0.000000e+00> : vector<8x32xf32>
    %17 = tpu.matmul %1, %16, %cst_17 {dimension_numbers = #tpu.dot_dimension_numbers<[1], [0], [0], [1], [0, 0, 1, 1], [], []>} : vector<8x32xf32>, vector<32x32xf32>, vector<8x32xf32> -> vector<8x32xf32>
    %c32_18 = arith.constant 32 : index
    %c0_19 = arith.constant 0 : index
    %18 = vector.load %arg7[%c32_18, %c0_19] : memref<96x32xf32, #tpu.memory_space<vmem>>, vector<32x32xf32>
    %cst_20 = arith.constant dense<0.000000e+00> : vector<8x32xf32>
    %19 = tpu.matmul %2, %18, %cst_20 {dimension_numbers = #tpu.dot_dimension_numbers<[1], [0], [0], [1], [0, 0, 1, 1], [], []>} : vector<8x32xf32>, vector<32x32xf32>, vector<8x32xf32> -> vector<8x32xf32>
    %20 = arith.addf %17, %19 : vector<8x32xf32>
    %21 = arith.mulf %1, %2 : vector<8x32xf32>
    %c64_21 = arith.constant 64 : index
    %c0_22 = arith.constant 0 : index
    %22 = vector.load %arg7[%c64_21, %c0_22] : memref<96x32xf32, #tpu.memory_space<vmem>>, vector<32x32xf32>
    %cst_23 = arith.constant dense<0.000000e+00> : vector<8x32xf32>
    %23 = tpu.matmul %21, %22, %cst_23 {dimension_numbers = #tpu.dot_dimension_numbers<[1], [0], [0], [1], [0, 0, 1, 1], [], []>} : vector<8x32xf32>, vector<32x32xf32>, vector<8x32xf32> -> vector<8x32xf32>
    %24 = arith.addf %20, %23 : vector<8x32xf32>
    %c0_24 = arith.constant 0 : index
    %c0_25 = arith.constant 0 : index
    %25 = vector.load %arg8[%c0_24, %c0_25] : memref<1x32xf32, #tpu.memory_space<vmem>>, vector<1x32xf32>
    %26 = vector.broadcast %25 : vector<1x32xf32> to vector<8x32xf32>
    %27 = arith.addf %24, %26 : vector<8x32xf32>
    %28 = arith.mulf %0, %3 : vector<8x32xf32>
    %cst_26 = arith.constant dense<0.000000e+00> : vector<8xf32>
    %29 = vector.multi_reduction <add>, %28, %cst_26 [1] : vector<8x32xf32> to vector<8xf32>
    %30 = vector.shape_cast %29 : vector<8xf32> to vector<8x1xf32>
    %31 = arith.mulf %15, %3 : vector<8x32xf32>
    %cst_27 = arith.constant dense<0.000000e+00> : vector<8xf32>
    %32 = vector.multi_reduction <add>, %31, %cst_27 [1] : vector<8x32xf32> to vector<8xf32>
    %33 = vector.shape_cast %32 : vector<8xf32> to vector<8x1xf32>
    %34 = arith.mulf %1, %3 : vector<8x32xf32>
    %cst_28 = arith.constant dense<0.000000e+00> : vector<8xf32>
    %35 = vector.multi_reduction <add>, %34, %cst_28 [1] : vector<8x32xf32> to vector<8xf32>
    %36 = vector.shape_cast %35 : vector<8xf32> to vector<8x1xf32>
    %37 = arith.mulf %27, %3 : vector<8x32xf32>
    %cst_29 = arith.constant dense<0.000000e+00> : vector<8xf32>
    %38 = vector.multi_reduction <add>, %37, %cst_29 [1] : vector<8x32xf32> to vector<8xf32>
    %39 = vector.shape_cast %38 : vector<8xf32> to vector<8x1xf32>
    %c0_30 = arith.constant 0 : index
    %40 = memref.load %arg0[%c0_30] : memref<4xf32, #tpu.memory_space<smem>>
    %41 = vector.broadcast %40 : f32 to vector<8x1xf32>
    %42 = arith.mulf %41, %30 : vector<8x1xf32>
    %c1 = arith.constant 1 : index
    %43 = memref.load %arg0[%c1] : memref<4xf32, #tpu.memory_space<smem>>
    %44 = vector.broadcast %43 : f32 to vector<8x1xf32>
    %45 = arith.mulf %44, %33 : vector<8x1xf32>
    %46 = arith.addf %42, %45 : vector<8x1xf32>
    %c2 = arith.constant 2 : index
    %47 = memref.load %arg0[%c2] : memref<4xf32, #tpu.memory_space<smem>>
    %48 = vector.broadcast %47 : f32 to vector<8x1xf32>
    %49 = arith.mulf %48, %36 : vector<8x1xf32>
    %50 = arith.addf %46, %49 : vector<8x1xf32>
    %c3 = arith.constant 3 : index
    %51 = memref.load %arg0[%c3] : memref<4xf32, #tpu.memory_space<smem>>
    %52 = vector.broadcast %51 : f32 to vector<8x1xf32>
    %53 = arith.mulf %52, %39 : vector<8x1xf32>
    %54 = arith.addf %50, %53 : vector<8x1xf32>
    %55 = arith.negf %54 : vector<8x1xf32>
    %56 = math.exp %55 : vector<8x1xf32>
    %cst_31 = arith.constant 1.000000e+00 : f32
    %57 = vector.broadcast %cst_31 : f32 to vector<8x1xf32>
    %58 = arith.addf %57, %56 : vector<8x1xf32>
    %59 = arith.divf %57, %58 : vector<8x1xf32>
    %c0_32 = arith.constant 0 : index
    %c0_33 = arith.constant 0 : index
    %60 = vector.load %arg9[%c0_32, %c0_33] : memref<8x1xf32, #tpu.memory_space<vmem>>, vector<8x1xf32>
    tpu.vector_store %arg9[%c0_32, %c0_33], %59 {strides = array<i32>} : memref<8x1xf32, #tpu.memory_space<vmem>>, vector<8x1xf32>,
    return
  }
}

</mosaic_0001>

<bundles_post_ra>
// kernel: fuserec_forward.3
= control target key start
LH: loop header
LB: loop body
LE: loop exit
PB: predicated region body
PF: predicated region fallthrough
CT: control target
= control target key end

     0   :  { %vm69_vm0 = vcmask 261120   ;;  %vm179_vm1 = vcmask 257024   ;;  %s283_s18 = smov 96   ;;  %s415_s1 = inlined_call_operand.vmem [shape: bf16[32,64], index: 1, kind: input, shape index: {}]   ;;  %s416_s0 = inlined_call_operand.vmem [shape: bf16[64,32], index: 0, kind: input, shape index: {}]   ;;  %s417_s2 = inlined_call_operand.vmem [shape: f32[64,64], index: 2, kind: input, shape index: {}]   ;;  %s418_s3 = inlined_call_operand.vmem [shape: bf16[64,32], index: 3, kind: output, shape index: {0}]   ;;  %s419_s4 = inlined_call_operand.vmem [shape: bf16[64,32], index: 4, kind: output, shape index: {1}]  }
   0x1   :  { %v277_v0 = vld [vmem:[%s415_s1] sm:$0xff]   ;;  %v278_v1 = vld [vmem:[%s415_s1 + $0x8] sm:$0xff]   ;;  %v281_v3 = vld [vmem:[%s416_s0 + $0x10] sm:$0xff]  }
   0x2   :  { %260 = vmatprep.subr.bf16.mxu0 %v277_v0  ;;  %272 = vmatprep.subr.bf16.mxu1 %v277_v0  ;;  %v279_v2 = vld [vmem:[%s416_s0] sm:$0xff]   ;;  %v280_v4 = vld [vmem:[%s416_s0 + $0x8] sm:$0xff]   ;;  %v282_v5 = vld [vmem:[%s416_s0 + $0x18] sm:$0xff]  }
   0x3   :  { %261 = vmatpush3.bf16.msra.mxu0 %v277_v0  ;;  %274 = vmatpush3.bf16.msra.mxu1 %v277_v0  ;;  %v31_v6 = vld [vmem:[%s417_s2 + $0x10] sm:$0xff]  ;;  %v29_v8 = vld [vmem:[%s417_s2] sm:$0xff]  ;;  %v32_v12 = vld [vmem:[%s417_s2 + $0x18] sm:$0xff] }
   0x4   :  { %262 = vmatprep.subr.bf16.mxu0 %v278_v1  ;;  %273 = vmatprep.subr.bf16.mxu1 %v278_v1  ;;  %v35_v7 = vld [vmem:[%s417_s2 + $0x30] sm:$0xff]  ;;  %v33_v9 = vld [vmem:[%s417_s2 + $0x20] sm:$0xff]  ;;  %v36_v13 = vld [vmem:[%s417_s2 + $0x38] sm:$0xff] }
   0x5   :  { %264 = vmatprep.mubr.msk.bf16.mxu0 %vm69_vm0, %v279_v2  ;;  %268 = vmatprep.mubr.msk.bf16.mxu1 %vm69_vm0, %v281_v3  ;;  %v30_v18 = vld [vmem:[%s417_s2 + $0x8] sm:$0xff] }
   0x6   :  { %v34_v19 = vld [vmem:[%s417_s2 + $0x28] sm:$0xff] }
   0x7   :  { %263 = vmatpush3.bf16.msra.mxu0 %v278_v1  ;;  %275 = vmatpush3.bf16.msra.mxu1 %v278_v1 }
   0xa   :  { %265 = vmatmul.mubr.msk.bf16.vlgmr.msra.gmra.mrb[0].mxu0 %vm69_vm0, %v280_v4  ;;  %269 = vmatmul.mubr.msk.bf16.vlgmr.msra.gmra.mrb[0].mxu1 %vm69_vm0, %v282_v5 }
  0xdd   :  { %v266_v10 = vpop.f32.mrb[0].mxu0  ;;  %v270_v11 = vpop.f32.mrb[0].mxu1 }
  0xde   :  { %v125_v14 = vadd.f32 %v266_v10, %v31_v6  ;;  %v116_v15 = vpop.f32.mrb[1].mxu0  ;;  %v141_v16 = vadd.f32 %v270_v11, %v35_v7  ;;  %v132_v17 = vpop.f32.mrb[1].mxu1 }
  0xdf   :  { %v117_v20 = vadd.f32 %v116_v15, %v29_v8  ;;  %v267_v21 = vpop.f32.mrb[2].mxu0  ;;  %v133_v22 = vadd.f32 %v132_v17, %v33_v9  ;;  %v271_v23 = vpop.f32.mrb[2].mxu1 }
  0xe0   :  { %v248_v24 = vpack.c.bf16 %v125_v14, %v125_v14  ;;  %v252_v25 = vpack.c.bf16 %v141_v16, %v141_v16  ;;  %v128_v26 = vadd.f32 %v267_v21, %v32_v12  ;;  %v119_v27 = vpop.f32.mrb[3].mxu0  ;;  %v144_v28 = vadd.f32 %v271_v23, %v36_v13  ;;  %v135_v29 = vpop.f32.mrb[3].mxu1 }
  0xe1   :  { %v246_v30 = vpack.c.bf16 %v117_v20, %v117_v20  ;;  %v250_v31 = vpack.c.bf16 %v133_v22, %v133_v22  ;;  %v120_v32 = vadd.f32 %v119_v27, %v30_v18  ;;  %v136_v33 = vadd.f32 %v135_v29, %v34_v19 }
  0xe2   :  { %182 = vst.msk [vmem:[%s418_s3 + $0x8] sm:$0xf] %vm179_vm1, %v248_v24  ;;  %186 = vst.msk [vmem:[%s418_s3 + $0x18] sm:$0xf] %vm179_vm1, %v252_v25  ;;  %v249_v34 = vpack.c.bf16 %v128_v26, %v128_v26  ;;  %v253_v35 = vpack.c.bf16 %v144_v28, %v144_v28  ;;  %192 = vrot.lane.b32.xlu1 %v248_v24, %s283_s18 }
  0xe3   :  { %180 = vst.msk [vmem:[%s418_s3] sm:$0xf] %vm179_vm1, %v246_v30  ;;  %184 = vst.msk [vmem:[%s418_s3 + $0x10] sm:$0xf] %vm179_vm1, %v250_v31  ;;  %v247_v36 = vpack.c.bf16 %v120_v32, %v120_v32  ;;  %v251_v37 = vpack.c.bf16 %v136_v33, %v136_v33  ;;  %188 = vrot.lane.b32.xlu0 %v246_v30, %s283_s18 }
  0xe4   :  { %183 = vst.msk [vmem:[%s418_s3 + $0xc] sm:$0xf] %vm179_vm1, %v249_v34  ;;  %187 = vst.msk [vmem:[%s418_s3 + $0x1c] sm:$0xf] %vm179_vm1, %v253_v35 }
  0xe5   :  { %181 = vst.msk [vmem:[%s418_s3 + $0x4] sm:$0xf] %vm179_vm1, %v247_v36  ;;  %185 = vst.msk [vmem:[%s418_s3 + $0x14] sm:$0xf] %vm179_vm1, %v251_v37 }
  0xe6   :  { %194 = vrot.lane.b32.xlu1 %v249_v34, %s283_s18 }
  0xe7   :  { %196 = vrot.lane.b32.xlu0 %v250_v31, %s283_s18 }
  0xea   :  { %198 = vrot.lane.b32.xlu1 %v251_v37, %s283_s18 }
  0xeb   :  { %190 = vrot.lane.b32.xlu0 %v247_v36, %s283_s18 }
  0xee   :  { %202 = vrot.lane.b32.xlu1 %v253_v35, %s283_s18 }
  0xef   :  { %200 = vrot.lane.b32.xlu0 %v252_v25, %s283_s18 }
 0x154   :  { %v193_v38 = vpop.permute.xlu1 %192 }
 0x155   :  { %214 = vst.msk [vmem:[%s419_s4 + $0x8] sm:$0xf] %vm179_vm1, %v193_v38  ;;  %v189_v39 = vpop.permute.xlu0 %188 }
 0x156   :  { %212 = vst.msk [vmem:[%s419_s4] sm:$0xf] %vm179_vm1, %v189_v39 }
 0x158   :  { %v195_v40 = vpop.permute.xlu1 %194 }
 0x159   :  { %215 = vst.msk [vmem:[%s419_s4 + $0xc] sm:$0xf] %vm179_vm1, %v195_v40  ;;  %v197_v41 = vpop.permute.xlu0 %196 }
 0x15a   :  { %216 = vst.msk [vmem:[%s419_s4 + $0x10] sm:$0xf] %vm179_vm1, %v197_v41 }
 0x15c   :  { %v199_v42 = vpop.permute.xlu1 %198 }
 0x15d   :  { %217 = vst.msk [vmem:[%s419_s4 + $0x14] sm:$0xf] %vm179_vm1, %v199_v42  ;;  %v191_v43 = vpop.permute.xlu0 %190 }
 0x15e   :  { %213 = vst.msk [vmem:[%s419_s4 + $0x4] sm:$0xf] %vm179_vm1, %v191_v43 }
 0x160   :  { %v203_v44 = vpop.permute.xlu1 %202 }
 0x161   :  { %219 = vst.msk [vmem:[%s419_s4 + $0x1c] sm:$0xf] %vm179_vm1, %v203_v44  ;;  %v201_v45 = vpop.permute.xlu0 %200 }
 0x162   :  { %218 = vst.msk [vmem:[%s419_s4 + $0x18] sm:$0xf] %vm179_vm1, %v201_v45 }

// kernel: fuserec_forward.4
= control target key start
LH: loop header
LB: loop body
LE: loop exit
PB: predicated region body
PF: predicated region fallthrough
CT: control target
= control target key end

     0   :  { %v1344_v0 = vmov 0.0   ;;  %vm1345_vm0 = vmmov 0   ;;  %v1346_v4 = vmov 0   ;;  %vm44_vm1 = vcmask 261120   ;;  %s1347_s28 = smov 64   ;;  %s1632_s3 = inlined_call_operand.vmem [shape: bf16[32,128], index: 3, kind: input, shape index: {}]   ;;  %s1633_s2 = inlined_call_operand.vmem [shape: bf16[32,128], index: 2, kind: input, shape index: {}]   ;;  %s1634_s1 = inlined_call_operand.vmem [shape: bf16[8,8,32], index: 1, kind: input, shape index: {}]   ;;  %s1635_s4 = inlined_call_operand.vmem [shape: f32[1,128], index: 4, kind: input, shape index: {}]   ;;  %s1636_s0 = inlined_call_operand.vmem [shape: s32[8,1], index: 0, kind: input, shape index: {}]   ;;  %s1637_s5 = inlined_call_operand.vmem [shape: f32[8,32], index: 5, kind: output, shape index: {}]  }
   0x1   :  { %1141 = vmatprep.subr.bf16.mxu0 %v1344_v0  ;;  %1149 = vmatprep.subr.bf16.mxu1 %v1344_v0  ;;  %v1384_v1 = vld [vmem:[%s1632_s3] sm:$0xff]   ;;  %v1399_v3 = vld [vmem:[%s1632_s3 + $0x8] sm:$0xff]  }
   0x2   :  { %v1389_v2 = vld [vmem:[%s1633_s2] sm:$0xff]   ;;  %1145 = vmatprep.mubr.msk.bf16.mxu0 %vm1345_vm0, %v1344_v0  ;;  %1153 = vmatprep.mubr.msk.bf16.mxu1 %vm1345_vm0, %v1344_v0  ;;  %v1407_v5 = vld [vmem:[%s1633_s2 + $0x8] sm:$0xff]  }
   0x3   :  { %1142 = vmatpush3.bf16.msra.mxu0 %v1384_v1  ;;  %1274 = vset.pattern.permute.xlu0 %v1346_v4  ;;  %v31_v6 = vld [vmem:[%s1634_s1] sm:$0xf]  ;;  %v1065_v28 = vld [vmem:[%s1634_s1 + $0x4] sm:$0xf]  ;;  %v1069_v54 = vld [vmem:[%s1634_s1 + $0x8] sm:$0xf] }
   0x4   :  { %1150 = vmatpush3.bf16.msra.mxu1 %v1389_v2  ;;  %1143 = vmatprep.subr.bf16.mxu0 %v1344_v0  ;;  %v1435_v8 = vld [vmem:[%s1635_s4] ss:$0 sm:$0xff]  ;;  %s1348_s4 = smov 32  }
   0x5   :  { %1151 = vmatprep.subr.bf16.mxu1 %v1344_v0  ;;  %1275 = vset.pattern.permute.xlu1 %v1346_v4 }
   0x7   :  { %1144 = vmatpush3.bf16.msra.mxu0 %v1399_v3 }
   0x8   :  { %1152 = vmatpush3.bf16.msra.mxu1 %v1407_v5  ;;  %1157 = vmatprep.subr.bf16.mxu0 %v1344_v0 }
   0x9   :  { %1165 = vmatprep.subr.bf16.mxu1 %v1344_v0 }
   0xa   :  { %1146 = vmatmul.mubr.bf16.vlgmr.msra.gmra.mrb[0].mxu0 %v1346_v4 }
   0xb   :  { %1154 = vmatmul.mubr.msk.bf16.vlgmr.msra.gmra.mrb[0].mxu1 %vm44_vm1, %v31_v6  ;;  %1158 = vmatpush3.bf16.msra.mxu0 %v1384_v1 }
   0xc   :  { %1166 = vmatpush3.bf16.msra.mxu1 %v1389_v2  ;;  %1159 = vmatprep.subr.bf16.mxu0 %v1344_v0 }
   0xd   :  { %1167 = vmatprep.subr.bf16.mxu1 %v1344_v0  ;;  %1169 = vmatprep.mubr.msk.bf16.mxu1 %vm1345_vm0, %v1344_v0 }
   0xe   :  { %1161 = vmatprep.mubr.msk.bf16.mxu0 %vm1345_vm0, %v1344_v0 }
   0xf   :  { %1160 = vmatpush3.bf16.msra.mxu0 %v1399_v3 }
  0x10   :  { %1168 = vmatpush3.bf16.msra.mxu1 %v1407_v5  ;;  %1173 = vmatprep.subr.bf16.mxu0 %v1344_v0 }
  0x11   :  { %1181 = vmatprep.subr.bf16.mxu1 %v1344_v0 }
  0x13   :  { %1170 = vmatmul.mubr.msk.bf16.vlgmr.msra.gmra.mrb[4].mxu1 %vm44_vm1, %v1065_v28 }
  0x14   :  { %1182 = vmatpush3.bf16.msra.mxu1 %v1389_v2  ;;  %1185 = vmatprep.mubr.msk.bf16.mxu1 %vm1345_vm0, %v1344_v0 }
  0x15   :  { %1183 = vmatprep.subr.bf16.mxu1 %v1344_v0 }
  0x18   :  { %1184 = vmatpush3.bf16.msra.mxu1 %v1407_v5 }
  0x19   :  { %1197 = vmatprep.subr.bf16.mxu1 %v1344_v0 }
  0x1b   :  { %1186 = vmatmul.mubr.msk.bf16.vlgmr.msra.gmra.mrb[8].mxu1 %vm44_vm1, %v1069_v54 }
  0x1c   :  { %1198 = vmatpush3.bf16.msra.mxu1 %v1389_v2  ;;  %1201 = vmatprep.mubr.msk.bf16.mxu1 %vm1345_vm0, %v1344_v0 }
  0x1d   :  { %1199 = vmatprep.subr.bf16.mxu1 %v1344_v0 }
  0x20   :  { %1200 = vmatpush3.bf16.msra.mxu1 %v1407_v5 }
  0x21   :  { %1213 = vmatprep.subr.bf16.mxu1 %v1344_v0 }
  0xdd   :  { %v82_v7 = vpop.f32.mrb[0].mxu0 }
  0xde   :  { %v137_v9 = vpop.f32.mrb[0].mxu1  ;;  %v1147_v10 = vpop.f32.mrb[1].mxu0 }
  0xdf   :  { %v138_v11 = vadd.f32 %v137_v9, %v82_v7  ;;  %v1155_v12 = vpop.f32.mrb[1].mxu1  ;;  %v85_v13 = vpop.f32.mrb[2].mxu0 }
  0xe0   :  { %v140_v14 = vpop.f32.mrb[2].mxu1  ;;  %v1148_v15 = vpop.f32.mrb[3].mxu0 }
  0xe1   :  { %v149_v16 = vadd.f32 %v1435_v8, %v138_v11  ;;  %v1156_v17 = vpop.f32.mrb[3].mxu1 }
  0xe3   :  { %1280 = vtanh.f32 %v149_v16  ;;  %v1064_v19 = vmul.f32 -1.442695, %v149_v16 }
  0xe5   :  { %1282 = vpow2.f32 %v1064_v19 }
  0xe6   :  { %v267_v33 = vpop.f32.mrb[4].mxu1 }
  0xe7   :  { %v1171_v34 = vpop.f32.mrb[5].mxu1 }
  0xe8   :  { %v270_v35 = vpop.f32.mrb[6].mxu1 }
  0xe9   :  { %v1172_v36 = vpop.f32.mrb[7].mxu1 }
  0xed   :  { %v1281_v18 = vpop.eup %1280 }
  0xee   :  { %159 = vrot.lane.b32.xlu0 %v1281_v18, %s1347_s28  ;;  %v391_v59 = vpop.f32.mrb[8].mxu1 }
  0xef   :  { %v1283_v20 = vpop.eup %1282  ;;  %v1187_v60 = vpop.f32.mrb[9].mxu1 }
  0xf0   :  { %v153_v21 = vadd.f32 1.0, %v1283_v20  ;;  %v394_v61 = vpop.f32.mrb[10].mxu1 }
  0xf1   :  { %v1188_v62 = vpop.f32.mrb[11].mxu1 }
  0xf2   :  { %1284 = vrcp.f32 %v153_v21 }
  0xfc   :  { %v1285_v22 = vpop.eup %1284 }
  0xfd   :  { %v157_v25 = vmul.f32 0.0, %v1285_v22 }
 0x160   :  { %v160_v23 = vpop.permute.xlu0 %159 }
 0x161   :  { %v162_v24 = vmul.f32 %v1285_v22, %v160_v23  ;;  %v1073_v23 = vld [vmem:[%s1634_s1 + $0xc] sm:$0xf] }
 0x162   :  { %1202 = vmatmul.mubr.msk.bf16.vlgmr.msra.gmra.mrb[12].mxu1 %vm44_vm1, %v1073_v23 }
 0x163   :  { %164 = vrot.lane.b32.xlu0 %v162_v24, %s1348_s4  ;;  %1214 = vmatpush3.bf16.msra.mxu1 %v1389_v2 }
 0x164   :  { %1217 = vmatprep.mubr.msk.bf16.mxu1 %vm1345_vm0, %v1344_v0  ;;  %1215 = vmatprep.subr.bf16.mxu1 %v1344_v0 }
 0x167   :  { %1216 = vmatpush3.bf16.msra.mxu1 %v1407_v5 }
 0x168   :  { %1229 = vmatprep.subr.bf16.mxu1 %v1344_v0 }
 0x1d5   :  { %v165_v26 = vpop.permute.xlu0 %164 }
 0x1d6   :  { %v167_v27 = vadd.f32 %v165_v26, %v157_v25 }
 0x1d8   :  { %1286 = vtanh.f32 %v167_v27 }
 0x1e2   :  { %v1287_v29 = vpop.eup %1286 }
 0x1e3   :  { %170 = vrot.lane.b32.xlu1 %v1287_v29, %s1347_s28 }
 0x235   :  { %v515_v28 = vpop.f32.mrb[12].mxu1 }
 0x236   :  { %v1203_v29 = vpop.f32.mrb[13].mxu1 }
 0x255   :  { %v171_v30 = vpop.permute.xlu1 %170 }
 0x256   :  { %v1451_v31 = vmul.f32 %v1285_v22, %v171_v30  ;;  %v518_v30 = vpop.f32.mrb[14].mxu1 }
 0x258   :  { %v183_v32 = vpack.c.bf16 %v1451_v31, %v1451_v31 }
 0x25a   :  { %185 = vrot.lane.b32.xlu1 %v183_v32, %s1348_s4  ;;  %v1204_v32 = vpop.f32.mrb[15].mxu1 }
 0x2cc   :  { %v186_v37 = vpop.permute.xlu1 %185 }
 0x2cd   :  { %1162 = vmatmul.mubr.msk.bf16.vlgmr.msra.gmra.mrb[4].mxu0 %vm44_vm1, %v186_v37 }
 0x2ce   :  { %1174 = vmatpush3.bf16.msra.mxu0 %v1384_v1  ;;  %1177 = vmatprep.mubr.msk.bf16.mxu0 %vm1345_vm0, %v1344_v0 }
 0x2cf   :  { %1175 = vmatprep.subr.bf16.mxu0 %v1344_v0 }
 0x2d2   :  { %1176 = vmatpush3.bf16.msra.mxu0 %v1399_v3 }
 0x2d3   :  { %1189 = vmatprep.subr.bf16.mxu0 %v1344_v0 }
 0x3a0   :  { %v224_v38 = vpop.f32.mrb[4].mxu0 }
 0x3a1   :  { %v268_v39 = vadd.f32 %v267_v33, %v224_v38  ;;  %v1163_v40 = vpop.f32.mrb[5].mxu0 }
 0x3a2   :  { %v227_v41 = vpop.f32.mrb[6].mxu0 }
 0x3a3   :  { %v273_v42 = vadd.f32 %v1435_v8, %v268_v39  ;;  %v1164_v43 = vpop.f32.mrb[7].mxu0 }
 0x3a5   :  { %1288 = vtanh.f32 %v273_v42  ;;  %v1068_v45 = vmul.f32 -1.442695, %v273_v42 }
 0x3a7   :  { %1290 = vpow2.f32 %v1068_v45 }
 0x3af   :  { %v1289_v44 = vpop.eup %1288 }
 0x3b0   :  { %283 = vrot.lane.b32.xlu0 %v1289_v44, %s1347_s28 }
 0x3b1   :  { %v1291_v46 = vpop.eup %1290 }
 0x3b2   :  { %v277_v47 = vadd.f32 1.0, %v1291_v46 }
 0x3b4   :  { %1292 = vrcp.f32 %v277_v47 }
 0x3be   :  { %v1293_v48 = vpop.eup %1292 }
 0x3bf   :  { %v281_v51 = vmul.f32 %v1293_v48, %v167_v27 }
 0x422   :  { %v284_v49 = vpop.permute.xlu0 %283 }
 0x423   :  { %v286_v50 = vmul.f32 %v1293_v48, %v284_v49 }
 0x425   :  { %288 = vrot.lane.b32.xlu1 %v286_v50, %s1348_s4  ;;  %v1077_v50 = vld [vmem:[%s1634_s1 + $0x10] sm:$0xf] }
 0x426   :  { %1218 = vmatmul.mubr.msk.bf16.vlgmr.msra.gmra.mrb[16].mxu1 %vm44_vm1, %v1077_v50 }
 0x427   :  { %1230 = vmatpush3.bf16.msra.mxu1 %v1389_v2  ;;  %1233 = vmatprep.mubr.msk.bf16.mxu1 %vm1345_vm0, %v1344_v0 }
 0x428   :  { %1231 = vmatprep.subr.bf16.mxu1 %v1344_v0 }
 0x42b   :  { %1232 = vmatpush3.bf16.msra.mxu1 %v1407_v5 }
 0x42c   :  { %1245 = vmatprep.subr.bf16.mxu1 %v1344_v0 }
 0x497   :  { %v289_v52 = vpop.permute.xlu1 %288 }
 0x498   :  { %v291_v53 = vadd.f32 %v289_v52, %v281_v51 }
 0x49a   :  { %1294 = vtanh.f32 %v291_v53 }
 0x4a4   :  { %v1295_v55 = vpop.eup %1294 }
 0x4a5   :  { %294 = vrot.lane.b32.xlu0 %v1295_v55, %s1347_s28 }
 0x4f9   :  { %v639_v55 = vpop.f32.mrb[16].mxu1 }
 0x517   :  { %v295_v56 = vpop.permute.xlu0 %294 }
 0x518   :  { %v1477_v57 = vmul.f32 %v1293_v48, %v295_v56  ;;  %v1219_v56 = vpop.f32.mrb[17].mxu1 }
 0x51a   :  { %v307_v58 = vpack.c.bf16 %v1477_v57, %v1477_v57 }
 0x51c   :  { %309 = vrot.lane.b32.xlu1 %v307_v58, %s1348_s4  ;;  %v642_v58 = vpop.f32.mrb[18].mxu1 }
 0x58e   :  { %v310_v63 = vpop.permute.xlu1 %309 }
 0x58f   :  { %1178 = vmatmul.mubr.msk.bf16.vlgmr.msra.gmra.mrb[8].mxu0 %vm44_vm1, %v310_v63 }
 0x590   :  { %1190 = vmatpush3.bf16.msra.mxu0 %v1384_v1  ;;  %1193 = vmatprep.mubr.msk.bf16.mxu0 %vm1345_vm0, %v1344_v0 }
 0x591   :  { %1191 = vmatprep.subr.bf16.mxu0 %v1344_v0 }
 0x594   :  { %1192 = vmatpush3.bf16.msra.mxu0 %v1399_v3 }
 0x595   :  { %1205 = vmatprep.subr.bf16.mxu0 %v1344_v0 }
 0x662   :  { %v348_v6 = vpop.f32.mrb[8].mxu0 }
 0x663   :  { %v392_v7 = vadd.f32 %v391_v59, %v348_v6  ;;  %v1179_v9 = vpop.f32.mrb[9].mxu0  ;;  %v1220_v59 = vpop.f32.mrb[19].mxu1 }
 0x664   :  { %v351_v10 = vpop.f32.mrb[10].mxu0 }
 0x665   :  { %v397_v11 = vadd.f32 %v1435_v8, %v392_v7  ;;  %v1180_v12 = vpop.f32.mrb[11].mxu0 }
 0x667   :  { %1296 = vtanh.f32 %v397_v11  ;;  %v1072_v14 = vmul.f32 -1.442695, %v397_v11 }
 0x669   :  { %1298 = vpow2.f32 %v1072_v14 }
 0x671   :  { %v1297_v13 = vpop.eup %1296 }
 0x672   :  { %407 = vrot.lane.b32.xlu0 %v1297_v13, %s1347_s28 }
 0x673   :  { %v1299_v15 = vpop.eup %1298 }
 0x674   :  { %v401_v16 = vadd.f32 1.0, %v1299_v15 }
 0x676   :  { %1300 = vrcp.f32 %v401_v16 }
 0x680   :  { %v1301_v17 = vpop.eup %1300 }
 0x681   :  { %v405_v20 = vmul.f32 %v1301_v17, %v291_v53 }
 0x6e4   :  { %v408_v18 = vpop.permute.xlu0 %407 }
 0x6e5   :  { %v410_v19 = vmul.f32 %v1301_v17, %v408_v18 }
 0x6e7   :  { %412 = vrot.lane.b32.xlu1 %v410_v19, %s1348_s4 }
 0x759   :  { %v413_v21 = vpop.permute.xlu1 %412 }
 0x75a   :  { %v415_v22 = vadd.f32 %v413_v21, %v405_v20  ;;  %v1081_v20 = vld [vmem:[%s1634_s1 + $0x14] sm:$0xf] }
 0x75b   :  { %1234 = vmatmul.mubr.msk.bf16.vlgmr.msra.gmra.mrb[20].mxu1 %vm44_vm1, %v1081_v20 }
 0x75c   :  { %1302 = vtanh.f32 %v415_v22  ;;  %1246 = vmatpush3.bf16.msra.mxu1 %v1389_v2  ;;  %1249 = vmatprep.mubr.msk.bf16.mxu1 %vm1345_vm0, %v1344_v0 }
 0x75d   :  { %1247 = vmatprep.subr.bf16.mxu1 %v1344_v0 }
 0x760   :  { %1248 = vmatpush3.bf16.msra.mxu1 %v1407_v5 }
 0x761   :  { %1261 = vmatprep.subr.bf16.mxu1 %v1344_v0 }
 0x766   :  { %v1303_v24 = vpop.eup %1302 }
 0x767   :  { %418 = vrot.lane.b32.xlu0 %v1303_v24, %s1347_s28 }
 0x7d9   :  { %v419_v25 = vpop.permute.xlu0 %418 }
 0x7da   :  { %v1503_v26 = vmul.f32 %v1301_v17, %v419_v25 }
 0x7dc   :  { %v431_v27 = vpack.c.bf16 %v1503_v26, %v1503_v26 }
 0x7de   :  { %433 = vrot.lane.b32.xlu1 %v431_v27, %s1348_s4 }
 0x82e   :  { %v763_v25 = vpop.f32.mrb[20].mxu1 }
 0x82f   :  { %v1235_v27 = vpop.f32.mrb[21].mxu1 }
 0x850   :  { %v434_v33 = vpop.permute.xlu1 %433 }
 0x851   :  { %1194 = vmatmul.mubr.msk.bf16.vlgmr.msra.gmra.mrb[12].mxu0 %vm44_vm1, %v434_v33 }
 0x852   :  { %1206 = vmatpush3.bf16.msra.mxu0 %v1384_v1  ;;  %1209 = vmatprep.mubr.msk.bf16.mxu0 %vm1345_vm0, %v1344_v0 }
 0x853   :  { %1207 = vmatprep.subr.bf16.mxu0 %v1344_v0 }
 0x856   :  { %1208 = vmatpush3.bf16.msra.mxu0 %v1399_v3 }
 0x857   :  { %1221 = vmatprep.subr.bf16.mxu0 %v1344_v0 }
 0x924   :  { %v472_v34 = vpop.f32.mrb[12].mxu0 }
 0x925   :  { %v516_v35 = vadd.f32 %v515_v28, %v472_v34  ;;  %v1195_v36 = vpop.f32.mrb[13].mxu0  ;;  %v766_v28 = vpop.f32.mrb[22].mxu1 }
 0x926   :  { %v475_v37 = vpop.f32.mrb[14].mxu0  ;;  %v1236_v29 = vpop.f32.mrb[23].mxu1 }
 0x927   :  { %v521_v38 = vadd.f32 %v1435_v8, %v516_v35  ;;  %v1196_v39 = vpop.f32.mrb[15].mxu0 }
 0x929   :  { %1304 = vtanh.f32 %v521_v38  ;;  %v1076_v41 = vmul.f32 -1.442695, %v521_v38 }
 0x92b   :  { %1306 = vpow2.f32 %v1076_v41 }
 0x933   :  { %v1305_v40 = vpop.eup %1304 }
 0x934   :  { %531 = vrot.lane.b32.xlu0 %v1305_v40, %s1347_s28 }
 0x935   :  { %v1307_v42 = vpop.eup %1306 }
 0x936   :  { %v525_v43 = vadd.f32 1.0, %v1307_v42 }
 0x938   :  { %1308 = vrcp.f32 %v525_v43 }
 0x942   :  { %v1309_v44 = vpop.eup %1308 }
 0x943   :  { %v529_v47 = vmul.f32 %v1309_v44, %v415_v22 }
 0x9a6   :  { %v532_v45 = vpop.permute.xlu0 %531 }
 0x9a7   :  { %v534_v46 = vmul.f32 %v1309_v44, %v532_v45 }
 0x9a9   :  { %536 = vrot.lane.b32.xlu1 %v534_v46, %s1348_s4 }
 0xa1b   :  { %v537_v48 = vpop.permute.xlu1 %536 }
 0xa1c   :  { %v539_v49 = vadd.f32 %v537_v48, %v529_v47  ;;  %v1085_v48 = vld [vmem:[%s1634_s1 + $0x18] sm:$0xf] }
 0xa1d   :  { %1250 = vmatmul.mubr.msk.bf16.vlgmr.msra.gmra.mrb[24].mxu1 %vm44_vm1, %v1085_v48 }
 0xa1e   :  { %1310 = vtanh.f32 %v539_v49  ;;  %1262 = vmatpush3.bf16.msra.mxu1 %v1389_v2  ;;  %1265 = vmatprep.mubr.msk.bf16.mxu1 %vm1345_vm0, %v1344_v0 }
 0xa1f   :  { %1263 = vmatprep.subr.bf16.mxu1 %v1344_v0 }
 0xa22   :  { %1264 = vmatpush3.bf16.msra.mxu1 %v1407_v5 }
 0xa28   :  { %v1311_v51 = vpop.eup %1310 }
 0xa29   :  { %542 = vrot.lane.b32.xlu0 %v1311_v51, %s1347_s28 }
 0xa9b   :  { %v543_v52 = vpop.permute.xlu0 %542 }
 0xa9c   :  { %v1529_v53 = vmul.f32 %v1309_v44, %v543_v52 }
 0xa9e   :  { %v555_v54 = vpack.c.bf16 %v1529_v53, %v1529_v53 }
 0xaa0   :  { %557 = vrot.lane.b32.xlu1 %v555_v54, %s1348_s4 }
 0xaf0   :  { %v887_v54 = vpop.f32.mrb[24].mxu1 }
 0xaf1   :  { %v1251_v2 = vpop.f32.mrb[25].mxu1 }
 0xb12   :  { %v558_v60 = vpop.permute.xlu1 %557 }
 0xb13   :  { %1210 = vmatmul.mubr.msk.bf16.vlgmr.msra.gmra.mrb[16].mxu0 %vm44_vm1, %v558_v60 }
 0xb14   :  { %1222 = vmatpush3.bf16.msra.mxu0 %v1384_v1  ;;  %1225 = vmatprep.mubr.msk.bf16.mxu0 %vm1345_vm0, %v1344_v0 }
 0xb15   :  { %1223 = vmatprep.subr.bf16.mxu0 %v1344_v0 }
 0xb18   :  { %1224 = vmatpush3.bf16.msra.mxu0 %v1399_v3 }
 0xb19   :  { %1237 = vmatprep.subr.bf16.mxu0 %v1344_v0 }
 0xbe6   :  { %v596_v61 = vpop.f32.mrb[16].mxu0 }
 0xbe7   :  { %v640_v62 = vadd.f32 %v639_v55, %v596_v61  ;;  %v1211_v63 = vpop.f32.mrb[17].mxu0  ;;  %v890_v55 = vpop.f32.mrb[26].mxu1 }
 0xbe8   :  { %v599_v6 = vpop.f32.mrb[18].mxu0  ;;  %v1252_v56 = vpop.f32.mrb[27].mxu1 }
 0xbe9   :  { %v645_v7 = vadd.f32 %v1435_v8, %v640_v62  ;;  %v1212_v9 = vpop.f32.mrb[19].mxu0 }
 0xbeb   :  { %1312 = vtanh.f32 %v645_v7  ;;  %v1080_v11 = vmul.f32 -1.442695, %v645_v7 }
 0xbed   :  { %1314 = vpow2.f32 %v1080_v11 }
 0xbf5   :  { %v1313_v10 = vpop.eup %1312 }
 0xbf6   :  { %655 = vrot.lane.b32.xlu0 %v1313_v10, %s1347_s28 }
 0xbf7   :  { %v1315_v12 = vpop.eup %1314 }
 0xbf8   :  { %v649_v13 = vadd.f32 1.0, %v1315_v12 }
 0xbfa   :  { %1316 = vrcp.f32 %v649_v13 }
 0xc04   :  { %v1317_v14 = vpop.eup %1316 }
 0xc05   :  { %v653_v17 = vmul.f32 %v1317_v14, %v539_v49 }
 0xc68   :  { %v656_v15 = vpop.permute.xlu0 %655 }
 0xc69   :  { %v658_v16 = vmul.f32 %v1317_v14, %v656_v15 }
 0xc6b   :  { %660 = vrot.lane.b32.xlu1 %v658_v16, %s1348_s4 }
 0xcdd   :  { %v661_v18 = vpop.permute.xlu1 %660 }
 0xcde   :  { %v663_v19 = vadd.f32 %v661_v18, %v653_v17 }
 0xce0   :  { %1318 = vtanh.f32 %v663_v19 }
 0xcea   :  { %v1319_v21 = vpop.eup %1318 }
 0xceb   :  { %666 = vrot.lane.b32.xlu0 %v1319_v21, %s1347_s28 }
 0xd5d   :  { %v667_v22 = vpop.permute.xlu0 %666 }
 0xd5e   :  { %v1555_v23 = vmul.f32 %v1317_v14, %v667_v22  ;;  %v1089_v14 = vld [vmem:[%s1634_s1 + $0x1c] sm:$0xf] }
 0xd5f   :  { %1266 = vmatmul.mubr.msk.bf16.vlgmr.msra.gmra.mrb[28].mxu1 %vm44_vm1, %v1089_v14 }
 0xd60   :  { %v679_v24 = vpack.c.bf16 %v1555_v23, %v1555_v23 }
 0xd62   :  { %681 = vrot.lane.b32.xlu1 %v679_v24, %s1348_s4 }
 0xdd4   :  { %v682_v30 = vpop.permute.xlu1 %681 }
 0xdd5   :  { %1226 = vmatmul.mubr.msk.bf16.vlgmr.msra.gmra.mrb[20].mxu0 %vm44_vm1, %v682_v30 }
 0xdd6   :  { %1238 = vmatpush3.bf16.msra.mxu0 %v1384_v1  ;;  %1241 = vmatprep.mubr.msk.bf16.mxu0 %vm1345_vm0, %v1344_v0 }
 0xdd7   :  { %1239 = vmatprep.subr.bf16.mxu0 %v1344_v0 }
 0xdda   :  { %1240 = vmatpush3.bf16.msra.mxu0 %v1399_v3 }
 0xddb   :  { %1253 = vmatprep.subr.bf16.mxu0 %v1344_v0 }
 0xea8   :  { %v720_v32 = vpop.f32.mrb[20].mxu0 }
 0xea9   :  { %v764_v33 = vadd.f32 %v763_v25, %v720_v32  ;;  %v1227_v34 = vpop.f32.mrb[21].mxu0 }
 0xeaa   :  { %v723_v35 = vpop.f32.mrb[22].mxu0 }
 0xeab   :  { %v769_v36 = vadd.f32 %v1435_v8, %v764_v33  ;;  %v1228_v37 = vpop.f32.mrb[23].mxu0  ;;  %v21_v33 = vld [vmem:[%s1636_s0] sm:$0xff] }
 0xeac   :  { %vm174_vm2 = vcmp.eq.s32.totalorder %v21_v33, 0  ;;  %vm546_vm3 = vcmp.eq.s32.totalorder %v21_v33, 3  ;;  %vm794_vm4 = vcmp.eq.s32.totalorder %v21_v33, 5  ;;  %vm1042_vm5 = vcmp.eq.s32.totalorder %v21_v33, 7 }
 0xead   :  { %1320 = vtanh.f32 %v769_v36  ;;  %v1084_v39 = vmul.f32 -1.442695, %v769_v36  ;;  %v175_v35 = vsel %vm174_vm2, 1, %v1346_v4  ;;  %v547_v36 = vsel %vm546_vm3, 1, %v1346_v4 }
 0xeae   :  { %v1043_v37 = vsel %vm1042_vm5, 1, %v1346_v4  ;;  %vm298_vm6 = vcmp.eq.s32.totalorder %v21_v33, 1  ;;  %vm422_vm7 = vcmp.eq.s32.totalorder %v21_v33, 2  ;;  %vm670_vm8 = vcmp.eq.s32.totalorder %v21_v33, 4 }
 0xeaf   :  { %1322 = vpow2.f32 %v1084_v39  ;;  %vm918_vm9 = vcmp.eq.s32.totalorder %v21_v33, 6 }
 0xeb7   :  { %v1321_v38 = vpop.eup %1320 }
 0xeb8   :  { %779 = vrot.lane.b32.xlu0 %v1321_v38, %s1347_s28 }
 0xeb9   :  { %v1323_v40 = vpop.eup %1322 }
 0xeba   :  { %v773_v41 = vadd.f32 1.0, %v1323_v40 }
 0xebc   :  { %1324 = vrcp.f32 %v773_v41 }
 0xec6   :  { %v1325_v42 = vpop.eup %1324 }
 0xec7   :  { %v777_v45 = vmul.f32 %v1325_v42, %v663_v19  ;;  %v1011_v19 = vpop.f32.mrb[28].mxu1 }
 0xec8   :  { %v1267_v20 = vpop.f32.mrb[29].mxu1 }
 0xec9   :  { %v1014_v21 = vpop.f32.mrb[30].mxu1 }
 0xeca   :  { %v1268_v22 = vpop.f32.mrb[31].mxu1 }
 0xf2a   :  { %v780_v43 = vpop.permute.xlu0 %779 }
 0xf2b   :  { %v782_v44 = vmul.f32 %v1325_v42, %v780_v43 }
 0xf2d   :  { %784 = vrot.lane.b32.xlu1 %v782_v44, %s1348_s4  ;;  %v299_v44 = vsel %vm298_vm6, 1, %v1346_v4 }
 0xf9f   :  { %v785_v46 = vpop.permute.xlu1 %784 }
 0xfa0   :  { %v787_v47 = vadd.f32 %v785_v46, %v777_v45  ;;  %v423_v45 = vsel %vm422_vm7, 1, %v1346_v4  ;;  %v671_v46 = vsel %vm670_vm8, 1, %v1346_v4 }
 0xfa2   :  { %1326 = vtanh.f32 %v787_v47 }
 0xfac   :  { %v1327_v49 = vpop.eup %1326 }
 0xfad   :  { %790 = vrot.lane.b32.xlu0 %v1327_v49, %s1347_s28 }
0x101f   :  { %v791_v50 = vpop.permute.xlu0 %790 }
0x1020   :  { %v1580_v51 = vmul.f32 %v1325_v42, %v791_v50 }
0x1022   :  { %v803_v52 = vpack.c.bf16 %v1580_v51, %v1580_v51 }
0x1024   :  { %805 = vrot.lane.b32.xlu1 %v803_v52, %s1348_s4 }
0x1096   :  { %v806_v58 = vpop.permute.xlu1 %805 }
0x1097   :  { %1242 = vmatmul.mubr.msk.bf16.vlgmr.msra.gmra.mrb[24].mxu0 %vm44_vm1, %v806_v58 }
0x1098   :  { %1254 = vmatpush3.bf16.msra.mxu0 %v1384_v1  ;;  %1257 = vmatprep.mubr.msk.bf16.mxu0 %vm1345_vm0, %v1344_v0 }
0x1099   :  { %1255 = vmatprep.subr.bf16.mxu0 %v1344_v0 }
0x109c   :  { %1256 = vmatpush3.bf16.msra.mxu0 %v1399_v3 }
0x116a   :  { %v844_v5 = vpop.f32.mrb[24].mxu0 }
0x116b   :  { %v888_v59 = vadd.f32 %v887_v54, %v844_v5  ;;  %v1243_v60 = vpop.f32.mrb[25].mxu0 }
0x116c   :  { %v847_v61 = vpop.f32.mrb[26].mxu0 }
0x116d   :  { %v893_v62 = vadd.f32 %v1435_v8, %v888_v59  ;;  %v1244_v63 = vpop.f32.mrb[27].mxu0 }
0x116f   :  { %1328 = vtanh.f32 %v893_v62  ;;  %v1088_v7 = vmul.f32 -1.442695, %v893_v62 }
0x1171   :  { %1330 = vpow2.f32 %v1088_v7 }
0x1179   :  { %v1329_v6 = vpop.eup %1328 }
0x117a   :  { %903 = vrot.lane.b32.xlu0 %v1329_v6, %s1347_s28 }
0x117b   :  { %v1331_v1 = vpop.eup %1330 }
0x117c   :  { %v897_v9 = vadd.f32 1.0, %v1331_v1 }
0x117e   :  { %1332 = vrcp.f32 %v897_v9 }
0x1188   :  { %v1333_v10 = vpop.eup %1332 }
0x1189   :  { %v901_v3 = vmul.f32 %v1333_v10, %v787_v47  ;;  %v919_v47 = vsel %vm918_vm9, 1, %v1346_v4 }
0x11ec   :  { %v904_v0 = vpop.permute.xlu0 %903 }
0x11ed   :  { %v906_v11 = vmul.f32 %v1333_v10, %v904_v0 }
0x11ef   :  { %908 = vrot.lane.b32.xlu1 %v906_v11, %s1348_s4 }
0x1261   :  { %v909_v12 = vpop.permute.xlu1 %908 }
0x1262   :  { %v911_v13 = vadd.f32 %v909_v12, %v901_v3 }
0x1264   :  { %1334 = vtanh.f32 %v911_v13 }
0x126e   :  { %v1335_v15 = vpop.eup %1334 }
0x126f   :  { %914 = vrot.lane.b32.xlu0 %v1335_v15, %s1347_s28 }
0x12e1   :  { %v915_v16 = vpop.permute.xlu0 %914 }
0x12e2   :  { %v1599_v17 = vmul.f32 %v1333_v10, %v915_v16 }
0x12e4   :  { %v927_v18 = vpack.c.bf16 %v1599_v17, %v1599_v17 }
0x12e6   :  { %929 = vrot.lane.b32.xlu1 %v927_v18, %s1348_s4 }
0x1358   :  { %v930_v24 = vpop.permute.xlu1 %929 }
0x1359   :  { %1258 = vmatmul.mubr.msk.bf16.vlgmr.msra.gmra.mrb[28].mxu0 %vm44_vm1, %v930_v24 }
0x142c   :  { %v968_v25 = vpop.f32.mrb[28].mxu0 }
0x142d   :  { %v1012_v27 = vadd.f32 %v1011_v19, %v968_v25  ;;  %v1259_v28 = vpop.f32.mrb[29].mxu0 }
0x142e   :  { %v971_v29 = vpop.f32.mrb[30].mxu0 }
0x142f   :  { %v1017_v30 = vadd.f32 %v1435_v8, %v1012_v27  ;;  %v1260_v32 = vpop.f32.mrb[31].mxu0  ;;  %v795_v8 = vsel %vm794_vm4, 1, %v1346_v4 }
0x1431   :  { %1336 = vtanh.f32 %v1017_v30  ;;  %v1092_v38 = vmul.f32 -1.442695, %v1017_v30 }
0x1433   :  { %1338 = vpow2.f32 %v1092_v38 }
0x143b   :  { %v1337_v34 = vpop.eup %1336 }
0x143c   :  { %1027 = vrot.lane.b32.xlu0 %v1337_v34, %s1347_s28 }
0x143d   :  { %v1339_v39 = vpop.eup %1338 }
0x143e   :  { %v1021_v40 = vadd.f32 1.0, %v1339_v39 }
0x1440   :  { %177 = vperm.xlu0 %1274, %v175_v35   ;;  %1340 = vrcp.f32 %v1021_v40 }
0x1444   :  { %549 = vperm.xlu0 %1274, %v547_v36  }
0x1448   :  { %797 = vperm.xlu0 %1274, %v795_v8  }
0x144a   :  { %v1341_v41 = vpop.eup %1340 }
0x144b   :  { %v1025_v48 = vmul.f32 %v1341_v41, %v911_v13 }
0x144c   :  { %1045 = vperm.xlu0 %1274, %v1043_v37  }
0x14ae   :  { %v1028_v42 = vpop.permute.xlu0 %1027 }
0x14af   :  { %v1030_v43 = vmul.f32 %v1341_v41, %v1028_v42 }
0x14b1   :  { %1032 = vrot.lane.b32.xlu1 %v1030_v43, %s1348_s4 }
0x14b5   :  { %301 = vperm.xlu1 %1275, %v299_v44  }
0x14b9   :  { %425 = vperm.xlu1 %1275, %v423_v45  }
0x14bd   :  { %673 = vperm.xlu1 %1275, %v671_v46  }
0x14bf   :  { %v178_v55 = vpop.permute.xlu0 %177 }
0x14c0   :  { %vm179_vm10 = vcmp.eq.s32.totalorder %v178_v55, 1 }
0x14c1   :  { %921 = vperm.xlu1 %1275, %v919_v47   ;;  %v180_v5 = vsel %vm179_vm10, %v1451_v31, 0.0 }
0x14c3   :  { %v550_v56 = vpop.permute.xlu0 %549 }
0x14c4   :  { %vm551_vm13 = vcmp.eq.s32.totalorder %v550_v56, 1 }
0x14c7   :  { %v798_v60 = vpop.permute.xlu0 %797 }
0x14c8   :  { %vm799_vm15 = vcmp.eq.s32.totalorder %v798_v60, 1 }
0x14cb   :  { %v1046_v6 = vpop.permute.xlu0 %1045 }
0x14cc   :  { %vm1047_vm2 = vcmp.eq.s32.totalorder %v1046_v6, 1 }
0x1523   :  { %v1033_v49 = vpop.permute.xlu1 %1032 }
0x1524   :  { %v1035_v50 = vadd.f32 %v1033_v49, %v1025_v48 }
0x1526   :  { %1342 = vtanh.f32 %v1035_v50 }
0x1530   :  { %v1343_v52 = vpop.eup %1342 }
0x1531   :  { %1038 = vrot.lane.b32.xlu1 %v1343_v52, %s1347_s28 }
0x1534   :  { %v302_v54 = vpop.permute.xlu1 %301 }
0x1535   :  { %vm303_vm11 = vcmp.eq.s32.totalorder %v302_v54, 1 }
0x1536   :  { %v304_v4 = vsel %vm303_vm11, %v1477_v57, %v180_v5 }
0x1538   :  { %v426_v2 = vpop.permute.xlu1 %425 }
0x1539   :  { %vm427_vm12 = vcmp.eq.s32.totalorder %v426_v2, 1 }
0x153a   :  { %v428_v59 = vsel %vm427_vm12, %v1503_v26, %v304_v4 }
0x153b   :  { %v552_v62 = vsel %vm551_vm13, %v1529_v53, %v428_v59 }
0x153c   :  { %v674_v58 = vpop.permute.xlu1 %673 }
0x153d   :  { %vm675_vm14 = vcmp.eq.s32.totalorder %v674_v58, 1 }
0x153e   :  { %v676_v63 = vsel %vm675_vm14, %v1555_v23, %v552_v62 }
0x153f   :  { %v800_v1 = vsel %vm799_vm15, %v1580_v51, %v676_v63 }
0x1540   :  { %v922_v61 = vpop.permute.xlu1 %921 }
0x1541   :  { %vm923_vm0 = vcmp.eq.s32.totalorder %v922_v61, 1 }
0x1542   :  { %v924_v31 = vsel %vm923_vm0, %v1599_v17, %v800_v1 }
0x15a3   :  { %v1039_v7 = vpop.permute.xlu1 %1038 }
0x15a4   :  { %v1041_v9 = vmul.f32 %v1341_v41, %v1039_v7 }
0x15a6   :  { %v1048_v57 = vsel %vm1047_vm2, %v1041_v9, %v924_v31 }
0x15a7   :  { %1050 = vrot.lane.b32.xlu0 %v1048_v57, %s1348_s4 }
0x1619   :  { %v1051_v26 = vpop.permute.xlu0 %1050 }
0x161a   :  { %1053 = vst.msk [vmem:[%s1637_s5] sm:$0xff] %vm44_vm1, %v1051_v26 }

// kernel: fuserec_forward.5
= control target key start
LH: loop header
LB: loop body
LE: loop exit
PB: predicated region body
PF: predicated region fallthrough
CT: control target
= control target key end

     0   :  { %14 = vsyncpa [#allocation3], 0  ;;  %s917_s0 = inlined_call_operand.vmem [shape: f32[4], index: 0, kind: input, shape index: {}]   ;;  %s918_s1 = inlined_call_operand.vmem [shape: f32[8,32], index: 1, kind: input, shape index: {}]   ;;  %s919_s2 = inlined_call_operand.vmem [shape: f32[8,32], index: 2, kind: input, shape index: {}]   ;;  %s920_s3 = inlined_call_operand.vmem [shape: f32[8,32], index: 3, kind: input, shape index: {}]   ;;  %s921_s4 = inlined_call_operand.vmem [shape: f32[8,32], index: 4, kind: input, shape index: {}]   ;;  %s922_s5 = inlined_call_operand.vmem [shape: f32[96,32], index: 5, kind: input, shape index: {}]   ;;  %s923_s6 = inlined_call_operand.vmem [shape: f32[1,32], index: 6, kind: input, shape index: {}]   ;;  %s924_s7 = inlined_call_operand.vmem [shape: f32[96,32], index: 7, kind: input, shape index: {}]   ;;  %s925_s8 = inlined_call_operand.vmem [shape: f32[1,32], index: 8, kind: input, shape index: {}]   ;;  %s926_s9 = inlined_call_operand.vmem [shape: f32[8,1], index: 9, kind: output, shape index: {}]  }
   0x1   :  { %s21_s11 = sshll.u32 %s917_s0, 4  ;;  %s22_s11 = int_to_ptr.vmem [resolvable:$true] %s21_s11 }
   0x2   :  { %s725_s12 = scalar_lea.vmem %s22_s11, 16  ;;  %p730_p1 = scmp.lt.s32.totalorder %s22_s11, %s22_s11 }
   0x3   :  { %p726_p0 = scmp.ne.s32.totalorder %s22_s11, %s725_s12  ;;  %p731_p2 = scmp.lt.s32.totalorder %s725_s12, %s725_s12 }
   0x5   :  { %p732_p3 = por %p731_p2, %p730_p1 }
   0x7   :  { %p733_p4 = pnand %p732_p3, %p726_p0 }
   0x9   :  { %736 = shalt.err (!%p733_p4)
}
   0xa   :  { %s739_s13 = smov [#allocation2]  }
   0xb   :  { %24 = dma.vmem_to_smem %s22_s11, 16, %s739_s13, [#allocation3]  }
   0xc   :  { %737 = dma.done.wait [#allocation3], 16  }
   0xd   :  { %738 = vsyncadd [#allocation3], 4294967280 }
   0xe   :  { %44 = sfence }
   0xf   :  { %v53_v0 = vld [vmem:[%s922_s5 + $0x20] sm:$0xff]  ;;  %v54_v1 = vld [vmem:[%s922_s5 + $0x28] sm:$0xff]  ;;  %v740_v3 = vmov 0.0|0.0   ;;  %v55_v6 = vld [vmem:[%s922_s5 + $0x30] sm:$0xff]  ;;  %vm741_vm0 = vmmov 0   ;;  %v742_v11 = vmov 0.0  }
  0x10   :  { %v49_v2 = vld [vmem:[%s922_s5] sm:$0xff]  ;;  %681 = vmatprep.subr.bf16.mxu0 %v740_v3  ;;  %v682_v4 = vpack.c.bf16 %v54_v1, %v53_v0  ;;  %687 = vmatprep.subr.bf16.mxu1 %v740_v3  ;;  %v50_v5 = vld [vmem:[%s922_s5 + $0x8] sm:$0xff]  ;;  %v56_v7 = vld [vmem:[%s922_s5 + $0x38] sm:$0xff]  ;;  %vm57_vm1 = vcmask 261120   ;;  %s582_s23 = sld [smem:[#allocation2 + $0x2]]  ;;  %s583_s24 = sld [smem:[#allocation2 + $0x3]] }
  0x11   :  { %v688_v8 = vpack.c.bf16 %v50_v5, %v49_v2  ;;  %v51_v9 = vld [vmem:[%s922_s5 + $0x10] sm:$0xff]  ;;  %v52_v10 = vld [vmem:[%s922_s5 + $0x18] sm:$0xff]  ;;  %623 = vmatprep.mubr.msk.f32.mxu0 %vm741_vm0, %v742_v11  ;;  %634 = vmatprep.mubr.msk.f32.mxu1 %vm741_vm0, %v742_v11  ;;  %v685_v12 = vpack.c.bf16 %v56_v7, %v55_v6  ;;  %v205_v14 = vld [vmem:[%s922_s5 + $0x40] sm:$0xff]  ;;  %vm566_vm2 = vcmask 7168  }
  0x12   :  { %683 = vmatpush3.bf16.msra.mxu0 %v682_v4  ;;  %v691_v13 = vpack.c.bf16 %v52_v10, %v51_v9  ;;  %v206_v15 = vld [vmem:[%s922_s5 + $0x48] sm:$0xff]  ;;  %v295_v16 = vld [vmem:[%s924_s7 + $0x20] sm:$0xff]  ;;  %v207_v22 = vld [vmem:[%s922_s5 + $0x50] sm:$0xff] }
  0x13   :  { %689 = vmatpush3.bf16.msra.mxu1 %v688_v8  ;;  %684 = vmatprep.subr.bf16.mxu0 %v740_v3  ;;  %v296_v17 = vld [vmem:[%s924_s7 + $0x28] sm:$0xff]  ;;  %v47_v18 = vld [vmem:[%s920_s3] sm:$0xff]  ;;  %v694_v19 = vpack.c.bf16 %v206_v15, %v205_v14  ;;  %v208_v23 = vld [vmem:[%s922_s5 + $0x58] sm:$0xff]  ;;  %s581_s3 = sld [smem:[#allocation2 + $0x1]] }
  0x14   :  { %690 = vmatprep.subr.bf16.mxu1 %v740_v3  ;;  %v45_v20 = vld [vmem:[%s918_s1] sm:$0xff]  ;;  %v700_v21 = vpack.c.bf16 %v296_v17, %v295_v16  ;;  %v297_v24 = vld [vmem:[%s924_s7 + $0x30] sm:$0xff]  ;;  %v298_v25 = vld [vmem:[%s924_s7 + $0x38] sm:$0xff]  ;;  %v697_v26 = vpack.c.bf16 %v208_v23, %v207_v22 }
  0x15   :  { %v703_v27 = vpack.c.bf16 %v298_v25, %v297_v24  ;;  %v291_v28 = vld [vmem:[%s924_s7] sm:$0xff]  ;;  %v292_v29 = vld [vmem:[%s924_s7 + $0x8] sm:$0xff]  ;;  %v204_v32 = vmul.f32 %v47_v18, %v45_v20  ;;  %v293_v35 = vld [vmem:[%s924_s7 + $0x10] sm:$0xff] }
  0x16   :  { %686 = vmatpush3.bf16.msra.mxu0 %v685_v12  ;;  %v443_v30 = vld [vmem:[%s924_s7 + $0x40] sm:$0xff]  ;;  %v444_v31 = vld [vmem:[%s924_s7 + $0x48] sm:$0xff]  ;;  %v706_v33 = vpack.c.bf16 %v292_v29, %v291_v28  ;;  %v294_v36 = vld [vmem:[%s924_s7 + $0x18] sm:$0xff]  ;;  %v553_v14 = vstv %s582_s23 }
  0x17   :  { %692 = vmatpush3.bf16.msra.mxu1 %v691_v13  ;;  %693 = vmatprep.subr.bf16.mxu0 %v740_v3  ;;  %v712_v34 = vpack.c.bf16 %v444_v31, %v443_v30  ;;  %v445_v37 = vld [vmem:[%s924_s7 + $0x50] sm:$0xff]  ;;  %v446_v38 = vld [vmem:[%s924_s7 + $0x58] sm:$0xff]  ;;  %v709_v39 = vpack.c.bf16 %v294_v36, %v293_v35  ;;  %v46_v41 = vld [vmem:[%s919_s2] sm:$0xff] }
  0x18   :  { %699 = vmatprep.subr.bf16.mxu1 %v740_v3  ;;  %v715_v40 = vpack.c.bf16 %v446_v38, %v445_v37  ;;  %v442_v42 = vmul.f32 %v47_v18, %v46_v41  ;;  %v48_v43 = vld [vmem:[%s921_s4] sm:$0xff] }
  0x19   :  { %624 = vmatmul.mubr.msk.f32.vlgmr.msra.gmra.mrb[0].mxu0 %vm57_vm1, %v47_v18  ;;  %v529_v44 = vmul.f32 %v48_v43, %v45_v20  ;;  %v537_v46 = vmul.f32 %v48_v43, %v46_v41  ;;  %v576_v54 = vld [vmem:[%s923_s6] ss:$0 sm:$0xff]  ;;  %s545_s6 = sld [smem:[#allocation2]]  ;;  %v549_v10 = vstv %s581_s3 }
  0x1a   :  { %635 = vmatmul.mubr.msk.f32.vlgmr.msra.gmra.mrb[0].mxu1 %vm57_vm1, %v45_v20  ;;  %695 = vmatpush3.bf16.msra.mxu0 %v694_v19  ;;  %v580_v2 = vld [vmem:[%s925_s8] ss:$0 sm:$0xff] }
  0x1b   :  { %701 = vmatpush3.bf16.msra.mxu1 %v700_v21  ;;  %696 = vmatprep.subr.bf16.mxu0 %v740_v3  ;;  %v530_v45 = vsel %vm57_vm1, %v529_v44, 0.0  ;;  %v538_v47 = vsel %vm57_vm1, %v537_v46, 0.0 }
  0x1c   :  { %702 = vmatprep.subr.bf16.mxu1 %v740_v3  ;;  %645 = vmatprep.mubr.msk.f32.mxu0 %vm741_vm0, %v742_v11 }
  0x1d   :  { %656 = vmatprep.mubr.msk.f32.mxu1 %vm741_vm0, %v742_v11  ;;  %531 = vadd.xlane.f32.xlu0 %v530_v45 }
  0x1e   :  { %698 = vmatpush3.bf16.msra.mxu0 %v697_v26  ;;  %539 = vadd.xlane.f32.xlu1 %v538_v47 }
  0x1f   :  { %704 = vmatpush3.bf16.msra.mxu1 %v703_v27  ;;  %705 = vmatprep.subr.bf16.mxu0 %v740_v3  ;;  %v546_v9 = vstv %s545_s6 }
  0x20   :  { %711 = vmatprep.subr.bf16.mxu1 %v740_v3 }
  0x21   :  { %646 = vmatmul.mubr.msk.f32.vlgmr.msra.gmra.mrb[2].mxu0 %vm57_vm1, %v204_v32 }
  0x22   :  { %707 = vmatpush3.bf16.msra.mxu0 %v706_v33  ;;  %657 = vmatmul.mubr.msk.f32.vlgmr.msra.gmra.mrb[2].mxu1 %vm57_vm1, %v47_v18  ;;  %v557_v18 = vstv %s583_s24 }
  0x23   :  { %713 = vmatpush3.bf16.msra.mxu1 %v712_v34  ;;  %708 = vmatprep.subr.bf16.mxu0 %v740_v3 }
  0x24   :  { %714 = vmatprep.subr.bf16.mxu1 %v740_v3  ;;  %667 = vmatprep.mubr.msk.f32.mxu0 %vm741_vm0, %v742_v11 }
  0x25   :  { %678 = vmatprep.mubr.msk.f32.mxu1 %vm741_vm0, %v742_v11 }
  0x26   :  { %710 = vmatpush3.bf16.msra.mxu0 %v709_v39 }
  0x27   :  { %716 = vmatpush3.bf16.msra.mxu1 %v715_v40 }
  0x29   :  { %668 = vmatmul.mubr.msk.f32.vlgmr.msra.gmra.mrb[4].mxu0 %vm57_vm1, %v46_v41 }
  0x2a   :  { %679 = vmatmul.mubr.msk.f32.vlgmr.msra.gmra.mrb[4].mxu1 %vm57_vm1, %v442_v42 }
  0xaa   :  { %v532_v8 = vpop.xlane.xlu0 %531 }
  0xab   :  { %v547_v12 = vmul.f32 %v546_v9, %v532_v8  ;;  %v540_v15 = vpop.xlane.xlu1 %539 }
  0xac   :  { %v554_v17 = vmul.f32 %v553_v14, %v540_v15 }
  0xec   :  { %v127_v48 = vpop.f32.mrb[0].mxu0 }
  0xed   :  { %v625_v49 = vpop.f32.mrb[1].mxu0  ;;  %v200_v50 = vpop.f32.mrb[0].mxu1 }
  0xee   :  { %v201_v51 = vadd.f32 %v200_v50, %v127_v48  ;;  %v636_v52 = vpop.f32.mrb[1].mxu1 }
  0xf4   :  { %v278_v53 = vpop.f32.mrb[2].mxu0 }
  0xf5   :  { %v282_v55 = vadd.f32 %v278_v53, %v201_v51  ;;  %v647_v56 = vpop.f32.mrb[3].mxu0  ;;  %v365_v57 = vpop.f32.mrb[2].mxu1 }
  0xf6   :  { %v658_v58 = vpop.f32.mrb[3].mxu1 }
  0xf7   :  { %v290_v59 = vadd.f32 %v576_v54, %v282_v55 }
  0xf9   :  { %v533_v60 = vmul.f32 %v290_v59, %v48_v43 }
  0xfb   :  { %v534_v61 = vsel %vm57_vm1, %v533_v60, 0.0 }
  0xfc   :  { %v438_v62 = vpop.f32.mrb[4].mxu0  ;;  %535 = vadd.xlane.f32.xlu0 %v534_v61 }
  0xfd   :  { %v439_v63 = vadd.f32 %v438_v62, %v365_v57  ;;  %v669_v0 = vpop.f32.mrb[5].mxu0  ;;  %v516_v1 = vpop.f32.mrb[4].mxu1 }
  0xfe   :  { %v680_v3 = vpop.f32.mrb[5].mxu1 }
  0xff   :  { %v520_v4 = vadd.f32 %v516_v1, %v439_v63 }
 0x101   :  { %v528_v5 = vadd.f32 %v580_v2, %v520_v4 }
 0x103   :  { %v541_v6 = vmul.f32 %v528_v5, %v48_v43 }
 0x105   :  { %v542_v7 = vsel %vm57_vm1, %v541_v6, 0.0 }
 0x106   :  { %543 = vadd.xlane.f32.xlu1 %v542_v7 }
 0x189   :  { %v536_v11 = vpop.xlane.xlu0 %535 }
 0x18a   :  { %v550_v13 = vmul.f32 %v549_v10, %v536_v11 }
 0x18c   :  { %v551_v16 = vadd.f32 %v550_v13, %v547_v12 }
 0x18e   :  { %v555_v20 = vadd.f32 %v554_v17, %v551_v16 }
 0x193   :  { %v544_v19 = vpop.xlane.xlu1 %543 }
 0x194   :  { %v558_v21 = vmul.f32 %v557_v18, %v544_v19 }
 0x196   :  { %v559_v22 = vadd.f32 %v558_v21, %v555_v20 }
 0x198   :  { %v584_v23 = vmul.f32 -1.442695, %v559_v22 }
 0x19a   :  { %721 = vpow2.f32 %v584_v23 }
 0x1a4   :  { %v722_v24 = vpop.eup %721 }
 0x1a5   :  { %v563_v25 = vadd.f32 1.0, %v722_v24 }
 0x1a7   :  { %723 = vrcp.f32 %v563_v25 }
 0x1b1   :  { %v724_v26 = vpop.eup %723 }
 0x1b2   :  { %567 = vst.msk [vmem:[%s926_s9] sm:$0xff] %vm566_vm2, %v724_v26 }
 0x1b3   :  { %572 = vsyncpa [#allocation3], 1 }

</bundles_post_ra>
